<compile_context>
chip_gen: v5e
topology: v5e:2x2
jax: 0.10.0
libtpu: 0.0.40
codegen_flags: <defaults>
</compile_context>

<pallas_src>
import math
from functools import partial

import numpy as np
import jax
import jax.numpy as jnp
from jax.experimental import pallas as pl
from jax.experimental.pallas import tpu as pltpu

# torch.nn.RMSNorm(eps=None) uses torch.finfo(float32).eps
RMS_EPS = float(np.finfo(np.float32).eps)

_WEIGHT_NAMES = ["sa_wq", "sa_bq", "sa_wk", "sa_bk", "sa_wv", "sa_bv", "sa_wo", "sa_bo", "g1",
                 "ca_wq", "ca_bq", "ca_wk", "ca_bk", "ca_wv", "ca_bv", "ca_wo", "ca_bo", "g2",
                 "w1", "b1", "w2", "b2", "g3"]


def _gelu_exact(x):
    # torch nn.GELU() default: exact erf formulation
    return 0.5 * x * (1.0 + jax.lax.erf(x / jnp.float32(math.sqrt(2.0))))


def _rmsnorm(x, gamma):
    ms = jnp.mean(x * x, axis=-1, keepdims=True)
    return x * jax.lax.rsqrt(ms + RMS_EPS) * gamma


# --------------------------------- Pallas kernel ---------------------------------
def _make_decoder_kernel(head_num, has_self_mask, has_cross_mask):
    H = head_num

    def kernel(*refs):
        it = iter(refs)
        x_ref = next(it)                                   # (1, N1, C)  f32
        enc_ref = next(it)                                 # (1, N2, C)  bf16
        smask_ref = next(it) if has_self_mask else None    # (1, N1, N1) bf16 additive
        cmask_ref = next(it) if has_cross_mask else None   # (1, N1, N2) bf16 additive
        w_refs = [next(it) for _ in range(len(_WEIGHT_NAMES))]
        out_ref = next(it)                                 # (1, N1, C)  f32
        h_scratch = next(it)                               # (N1, C)     f32 residual stream

        (sa_wq, sa_bq, sa_wk, sa_bk, sa_wv, sa_bv, sa_wo, sa_bo, g1,
         ca_wq, ca_bq, ca_wk, ca_bk, ca_wv, ca_bv, ca_wo, ca_bo, g2,
         w1, b1, w2, b2, g3) = w_refs

        l = pl.program_id(1)

        # residual stream lives in VMEM across the whole layer stack
        @pl.when(l == 0)
        def _():
            h_scratch[...] = x_ref[0]

        x = h_scratch[...]                                 # (N1, C) f32
        enc_b = enc_ref[0]                                 # (N2, C) bf16
        smask = smask_ref[0].astype(jnp.float32) if has_self_mask else None
        cmask = cmask_ref[0].astype(jnp.float32) if has_cross_mask else None

        C = x.shape[-1]
        D = C // H

        def mha(q_bf, kv_bf, wq, bq, wk, bk, wv, bv, wo, bo, addmask):
            # Full-width projections (scale already folded into wq/bq).
            q = jnp.dot(q_bf, wq[0], preferred_element_type=jnp.float32) + bq[0]
            k = jnp.dot(kv_bf, wk[0], preferred_element_type=jnp.float32) + bk[0]
            v = jnp.dot(kv_bf, wv[0], preferred_element_type=jnp.float32) + bv[0]
            qb = q.astype(jnp.bfloat16)
            kb = k.astype(jnp.bfloat16)
            vb = v.astype(jnp.bfloat16)
            ctx_parts = []
            for h in range(H):                              # small H: python-unrolled
                sl = slice(h * D, (h + 1) * D)
                s = jax.lax.dot_general(
                    qb[:, sl], kb[:, sl],
                    dimension_numbers=(((1,), (1,)), ((), ())),
                    preferred_element_type=jnp.float32)     # (Nq, Nk)
                if addmask is not None:
                    s = s + addmask
                s = s - jnp.max(s, axis=-1, keepdims=True)
                e = jnp.exp(s)
                a = e * pl.reciprocal(jnp.sum(e, axis=-1, keepdims=True), approx=True)
                ctx_parts.append(jnp.dot(a.astype(jnp.bfloat16), vb[:, sl],
                                         preferred_element_type=jnp.float32))
            ctx = jnp.concatenate(ctx_parts, axis=-1) if H > 1 else ctx_parts[0]
            # single full-width output projection over the concatenated context
            return jnp.dot(ctx.astype(jnp.bfloat16), wo[0],
                           preferred_element_type=jnp.float32) + bo[0]

        # --- self attention + post-norm ---
        xb = x.astype(jnp.bfloat16)
        y = _rmsnorm(x + mha(xb, xb, sa_wq, sa_bq, sa_wk, sa_bk, sa_wv, sa_bv,
                             sa_wo, sa_bo, smask), g1[0])
        # --- cross attention + post-norm ---
        yb = y.astype(jnp.bfloat16)
        z = _rmsnorm(y + mha(yb, enc_b, ca_wq, ca_bq, ca_wk, ca_bk, ca_wv, ca_bv,
                             ca_wo, ca_bo, cmask), g2[0])
        # --- MLP + post-norm ---
        h1 = _gelu_exact(jnp.dot(z.astype(jnp.bfloat16), w1[0],
                                 preferred_element_type=jnp.float32) + b1[0])
        m = jnp.dot(h1.astype(jnp.bfloat16), w2[0],
                    preferred_element_type=jnp.float32) + b2[0]
        out = _rmsnorm(z + m, g3[0])

        h_scratch[...] = out

        @pl.when(l == pl.num_programs(1) - 1)
        def _():
            out_ref[0] = out.astype(out_ref.dtype)

    return kernel


def _buffered_spec(shape, index_map, nbuf):
    """BlockSpec with requested buffer depth; falls back to default if unsupported."""
    buffered = getattr(pl, "Buffered", None)
    if buffered is not None:
        try:
            return pl.BlockSpec(shape, index_map, pipeline_mode=buffered(nbuf))
        except TypeError:
            pass
    return pl.BlockSpec(shape, index_map)


def _nbytes(shape, dtype):
    return int(np.prod(shape)) * np.dtype(dtype).itemsize


def transformer_decoder_pallas(x, enc, stacked_params, head_num,
                               self_attention_mask=None, cross_attention_mask=None,
                               *, vmem_limit_bytes=None):
    """x: (B, N1, C) f32, enc: (B, N2, C) f32, stacked_params from prepare_decoder_params."""
    B, N1, C = x.shape
    _, N2, _ = enc.shape
    L = stacked_params["g1"].shape[0]

    self_add = None if self_attention_mask is None else _additive_mask(self_attention_mask)
    cross_add = None if cross_attention_mask is None else _additive_mask(cross_attention_mask)
    enc_bf = enc.astype(jnp.bfloat16)   # enc only feeds bf16 matmuls -> halve its DMA

    # x / enc / masks are constant along the layer axis -> single-buffered.
    def batch_spec(shape):
        return _buffered_spec((1,) + shape, lambda b, l: (b, 0, 0), 1)

    # per-layer weight blocks, double-buffered by default -> next layer prefetched.
    def layer_spec(arr):
        return pl.BlockSpec((1,) + arr.shape[1:], lambda b, l: (l, 0, 0))

    inputs = [x, enc_bf]
    in_specs = [batch_spec((N1, C)), batch_spec((N2, C))]
    if self_add is not None:
        inputs.append(self_add)
        in_specs.append(batch_spec((N1, N1)))
    if cross_add is not None:
        inputs.append(cross_add)
        in_specs.append(batch_spec((N1, N2)))
    for name in _WEIGHT_NAMES:
        w = stacked_params[name]
        inputs.append(w)
        in_specs.append(layer_spec(w))

    if vmem_limit_bytes is None:
        est = 0
        est += 2 * sum(_nbytes(stacked_params[n].shape[1:], stacked_params[n].dtype)
                       for n in _WEIGHT_NAMES)                      # weights, double-buffered
        est += _nbytes((N1, C), jnp.float32)                        # x, single-buffered
        est += _nbytes((N2, C), jnp.bfloat16)                       # enc, single-buffered
        if self_add is not None:
            est += _nbytes((N1, N1), jnp.bfloat16)
        if cross_add is not None:
            est += _nbytes((N1, N2), jnp.bfloat16)
        est += 2 * _nbytes((N1, C), jnp.float32)                    # output
        est += _nbytes((N1, C), jnp.float32)                        # residual scratch
        # rough headroom for live temporaries (scores, softmax, projections, MLP hidden)
        est += 6 * _nbytes((N1, max(N1, N2)), jnp.float32)
        est += 12 * _nbytes((max(N1, N2), C), jnp.float32)
        est += 3 * _nbytes((N1, 4 * C), jnp.float32)
        try:
            info = pltpu.get_tpu_info()
            phys_vmem = int(getattr(info, "vmem_capacity_bytes", 64 * 1024 * 1024))
        except Exception:
            phys_vmem = 64 * 1024 * 1024                            # assume v7x (tightest)
        vmem_limit_bytes = int(min(max(est * 5 // 4 + (2 << 20), 32 << 20),
                                   phys_vmem * 3 // 4))

    kernel = _make_decoder_kernel(head_num, self_add is not None, cross_add is not None)
    fn = pl.pallas_call(
        kernel,
        out_shape=jax.ShapeDtypeStruct((B, N1, C), jnp.float32),
        grid_spec=pltpu.PrefetchScalarGridSpec(
            num_scalar_prefetch=0,
            grid=(B, L),
            in_specs=in_specs,
            out_specs=pl.BlockSpec((1, N1, C), lambda b, l: (b, 0, 0)),
            scratch_shapes=[pltpu.VMEM((N1, C), jnp.float32)],
        ),
        compiler_params=pltpu.CompilerParams(
            dimension_semantics=("parallel", "arbitrary"),
            vmem_limit_bytes=vmem_limit_bytes,
        ),
    )
    return fn(*inputs)


# ----------------------- host-side weight repack (run ONCE, not per forward) -----------------------
def _prepare_block_params(p):
    """Fold 1/sqrt(C) into wq/bq, cast matmul weights to bf16, keep biases/gammas f32."""
    C = p["g1"].shape[0]
    scale = 1.0 / math.sqrt(C)
    out = {}
    for pre in ("sa_", "ca_"):
        out[pre + "wq"] = (p[pre + "wq"] * scale).astype(jnp.bfloat16)
        out[pre + "bq"] = (p[pre + "bq"] * scale).reshape(1, C).astype(jnp.float32)
        for nm in ("k", "v", "o"):
            out[pre + "w" + nm] = p[pre + "w" + nm].astype(jnp.bfloat16)
            out[pre + "b" + nm] = p[pre + "b" + nm].reshape(1, -1).astype(jnp.float32)
    out["w1"] = p["w1"].astype(jnp.bfloat16)
    out["b1"] = p["b1"].reshape(1, -1).astype(jnp.float32)
    out["w2"] = p["w2"].astype(jnp.bfloat16)
    out["b2"] = p["b2"].reshape(1, -1).astype(jnp.float32)
    for g in ("g1", "g2", "g3"):
        out[g] = p[g].reshape(1, -1).astype(jnp.float32)
    return out


def prepare_decoder_params(layer_params):
    """Repack and stack all layers' weights along a leading layer axis (done once at load time)."""
    per_layer = [_prepare_block_params(p) for p in layer_params]
    return {name: jnp.stack([lp[name] for lp in per_layer], axis=0) for name in _WEIGHT_NAMES}


def _additive_mask(mask01):
    # module semantics: positions where mask == 0 are masked out.  Stored as additive bf16
    # (0 / -1e30) -> half the HBM/VMEM footprint; upcast to f32 once inside the kernel.
    return jnp.where(mask01 == 0.0, jnp.float32(-1e30), jnp.float32(0.0)).astype(jnp.bfloat16)


# ------------------------- pure-JAX reference (for verification) -------------------------
def _bdot(a, b):
    return jnp.dot(a.astype(jnp.bfloat16), b.astype(jnp.bfloat16),
                   preferred_element_type=jnp.float32)


def mha_ref(q_in, kv_in, p, prefix, head_num, mask):
    B, N1, C = q_in.shape
    N2 = kv_in.shape[1]
    H, D = head_num, C // head_num
    q = _bdot(q_in, p[prefix + "wq"]) + p[prefix + "bq"]
    k = _bdot(kv_in, p[prefix + "wk"]) + p[prefix + "bk"]
    v = _bdot(kv_in, p[prefix + "wv"]) + p[prefix + "bv"]
    qh = q.reshape(B, N1, H, D).transpose(0, 2, 1, 3)
    kh = k.reshape(B, N2, H, D).transpose(0, 2, 1, 3)
    vh = v.reshape(B, N2, H, D).transpose(0, 2, 1, 3)
    s = jnp.einsum("bhqd,bhkd->bhqk", qh.astype(jnp.bfloat16), kh.astype(jnp.bfloat16),
                   preferred_element_type=jnp.float32) / math.sqrt(C)
    if mask is not None:
        s = jnp.where(mask[:, None, :, :] == 0.0, -jnp.inf, s)
    a = jax.nn.softmax(s, axis=-1)
    r = jnp.einsum("bhqk,bhkd->bhqd", a.astype(jnp.bfloat16), vh.astype(jnp.bfloat16),
                   preferred_element_type=jnp.float32)
    r = r.transpose(0, 2, 1, 3).reshape(B, N1, C)
    return _bdot(r, p[prefix + "wo"]) + p[prefix + "bo"]


def decoder_block_ref(x, enc, p, head_num, self_mask, cross_mask):
    a1 = mha_ref(x, x, p, "sa_", head_num, self_mask)
    y = _rmsnorm(x + a1, p["g1"])
    a2 = mha_ref(y, enc, p, "ca_", head_num, cross_mask)
    z = _rmsnorm(y + a2, p["g2"])
    h = _gelu_exact(_bdot(z, p["w1"]) + p["b1"])
    m = _bdot(h, p["w2"]) + p["b2"]
    return _rmsnorm(z + m, p["g3"])


def transformer_decoder_ref(x, enc, layer_params, head_num, self_mask=None, cross_mask=None):
    for p in layer_params:
        x = decoder_block_ref(x, enc, p, head_num, self_mask, cross_mask)
    return x


# ------------------------- deterministic parameter init -------------------------
def init_layer_params(key, hidden_dim):
    C, C4 = hidden_dim, 4 * hidden_dim
    ks = iter(jax.random.split(key, 20))
    s = 0.05

    def lin(din, dout):
        return (s * jax.random.normal(next(ks), (din, dout), jnp.float32),
                s * jax.random.normal(next(ks), (dout,), jnp.float32))

    p = {}
    for pre in ("sa_", "ca_"):
        p[pre + "wq"], p[pre + "bq"] = lin(C, C)
        p[pre + "wk"], p[pre + "bk"] = lin(C, C)
        p[pre + "wv"], p[pre + "bv"] = lin(C, C)
        p[pre + "wo"], p[pre + "bo"] = lin(C, C)
    p["w1"], p["b1"] = lin(C, C4)
    p["w2"], p["b2"] = lin(C4, C)
    p["g1"] = jnp.ones((C,), jnp.float32)   # RMSNorm weight init = 1
    p["g2"] = jnp.ones((C,), jnp.float32)
    p["g3"] = jnp.ones((C,), jnp.float32)
    return p


if __name__ == "__main__":
    # NOTE: production shapes should keep C, 4C and D multiples of 128 for lane-dense
    # stores; these are deliberately tiny smoke-test shapes.
    B, N1, N2, C, H, LAYERS = 2, 8, 16, 32, 4, 2

    root = jax.random.PRNGKey(0)
    kx, ke, *kl = jax.random.split(root, 2 + LAYERS)
    x = jax.random.normal(kx, (B, N1, C), jnp.float32)
    enc = jax.random.normal(ke, (B, N2, C), jnp.float32)

    # causal self-attention mask exercises the mask path; cross mask None exercises the
    # no-mask fast path (mask input + add skipped entirely).
    self_mask = jnp.broadcast_to(jnp.tril(jnp.ones((N1, N1), jnp.float32)), (B, N1, N1))
    cross_mask = None

    params = [init_layer_params(k, C) for k in kl]
    stacked = prepare_decoder_params(params)     # hoisted: weight repack runs once, not per forward

    out = transformer_decoder_pallas(x, enc, stacked, H, self_mask, cross_mask)
    out = jax.block_until_ready(out)

    ref = transformer_decoder_ref(x, enc, params, H, self_mask, cross_mask)
    ref = jax.block_until_ready(ref)

    assert out.shape == (B, N1, C)
    # tolerance covers approx-reciprocal softmax + bf16 scale-folding rounding differences
    np.testing.assert_allclose(np.asarray(out), np.asarray(ref), rtol=5e-3, atol=5e-3)
    print("KERNEL_OK")
</pallas_src>

<mosaic_0001>
module attributes {stable_mosaic.version = 11 : i64} {
  func.func @kernel(%arg0: i32, %arg1: i32, %arg2: memref<1x8x32xf32, #tpu.memory_space<vmem>>, %arg3: memref<1x16x32xbf16, #tpu.memory_space<vmem>>, %arg4: memref<1x8x8xbf16, #tpu.memory_space<vmem>>, %arg5: memref<1x32x32xbf16, #tpu.memory_space<vmem>>, %arg6: memref<1x1x32xf32, #tpu.memory_space<vmem>>, %arg7: memref<1x32x32xbf16, #tpu.memory_space<vmem>>, %arg8: memref<1x1x32xf32, #tpu.memory_space<vmem>>, %arg9: memref<1x32x32xbf16, #tpu.memory_space<vmem>>, %arg10: memref<1x1x32xf32, #tpu.memory_space<vmem>>, %arg11: memref<1x32x32xbf16, #tpu.memory_space<vmem>>, %arg12: memref<1x1x32xf32, #tpu.memory_space<vmem>>, %arg13: memref<1x1x32xf32, #tpu.memory_space<vmem>>, %arg14: memref<1x32x32xbf16, #tpu.memory_space<vmem>>, %arg15: memref<1x1x32xf32, #tpu.memory_space<vmem>>, %arg16: memref<1x32x32xbf16, #tpu.memory_space<vmem>>, %arg17: memref<1x1x32xf32, #tpu.memory_space<vmem>>, %arg18: memref<1x32x32xbf16, #tpu.memory_space<vmem>>, %arg19: memref<1x1x32xf32, #tpu.memory_space<vmem>>, %arg20: memref<1x32x32xbf16, #tpu.memory_space<vmem>>, %arg21: memref<1x1x32xf32, #tpu.memory_space<vmem>>, %arg22: memref<1x1x32xf32, #tpu.memory_space<vmem>>, %arg23: memref<1x32x128xbf16, #tpu.memory_space<vmem>>, %arg24: memref<1x1x128xf32, #tpu.memory_space<vmem>>, %arg25: memref<1x128x32xbf16, #tpu.memory_space<vmem>>, %arg26: memref<1x1x32xf32, #tpu.memory_space<vmem>>, %arg27: memref<1x1x32xf32, #tpu.memory_space<vmem>>, %arg28: memref<1x8x32xf32, #tpu.memory_space<vmem>>, %arg29: memref<8x32xf32, #tpu.memory_space<vmem>>) attributes {dimension_semantics = [#tpu.dimension_semantics<parallel>, #tpu.dimension_semantics<arbitrary>], iteration_bounds = array<i64: 2, 2>, scalar_prefetch = 0 : i64, scratch_operands = 1 : i64, tpu.core_type = #tpu.core_type<tc>, window_params = [{pipeline_mode = #tpu.pipeline_mode<synchronous>, transform_indices = @transform_0, window_bounds = array<i64: 1, 8, 32>}, {pipeline_mode = #tpu.pipeline_mode<synchronous>, transform_indices = @transform_1, window_bounds = array<i64: 1, 16, 32>}, {pipeline_mode = #tpu.pipeline_mode<synchronous>, transform_indices = @transform_2, window_bounds = array<i64: 1, 8, 8>}, {transform_indices = @transform_3, window_bounds = array<i64: 1, 32, 32>}, {transform_indices = @transform_4, window_bounds = array<i64: 1, 1, 32>}, {transform_indices = @transform_5, window_bounds = array<i64: 1, 32, 32>}, {transform_indices = @transform_6, window_bounds = array<i64: 1, 1, 32>}, {transform_indices = @transform_7, window_bounds = array<i64: 1, 32, 32>}, {transform_indices = @transform_8, window_bounds = array<i64: 1, 1, 32>}, {transform_indices = @transform_9, window_bounds = array<i64: 1, 32, 32>}, {transform_indices = @transform_10, window_bounds = array<i64: 1, 1, 32>}, {transform_indices = @transform_11, window_bounds = array<i64: 1, 1, 32>}, {transform_indices = @transform_12, window_bounds = array<i64: 1, 32, 32>}, {transform_indices = @transform_13, window_bounds = array<i64: 1, 1, 32>}, {transform_indices = @transform_14, window_bounds = array<i64: 1, 32, 32>}, {transform_indices = @transform_15, window_bounds = array<i64: 1, 1, 32>}, {transform_indices = @transform_16, window_bounds = array<i64: 1, 32, 32>}, {transform_indices = @transform_17, window_bounds = array<i64: 1, 1, 32>}, {transform_indices = @transform_18, window_bounds = array<i64: 1, 32, 32>}, {transform_indices = @transform_19, window_bounds = array<i64: 1, 1, 32>}, {transform_indices = @transform_20, window_bounds = array<i64: 1, 1, 32>}, {transform_indices = @transform_21, window_bounds = array<i64: 1, 32, 128>}, {transform_indices = @transform_22, window_bounds = array<i64: 1, 1, 128>}, {transform_indices = @transform_23, window_bounds = array<i64: 1, 128, 32>}, {transform_indices = @transform_24, window_bounds = array<i64: 1, 1, 32>}, {transform_indices = @transform_25, window_bounds = array<i64: 1, 1, 32>}, {transform_indices = @transform_26, window_bounds = array<i64: 1, 8, 32>}]} {
    %c0_i32 = arith.constant 0 : i32
    %0 = arith.cmpi eq, %arg1, %c0_i32 : i32
    %1 = arith.extui %0 : i1 to i32
    %c0_i32_0 = arith.constant 0 : i32
    %2 = arith.cmpi ne, %1, %c0_i32_0 : i32
    scf.if %2 {
      %c0_133 = arith.constant 0 : index
      %c0_134 = arith.constant 0 : index
      %c0_135 = arith.constant 0 : index
      %282 = vector.load %arg2[%c0_133, %c0_134, %c0_135] : memref<1x8x32xf32, #tpu.memory_space<vmem>>, vector<1x8x32xf32>
      %283 = vector.shape_cast %282 : vector<1x8x32xf32> to vector<8x32xf32>
      %c0_136 = arith.constant 0 : index
      %c0_137 = arith.constant 0 : index
      %284 = vector.load %arg29[%c0_136, %c0_137] : memref<8x32xf32, #tpu.memory_space<vmem>>, vector<8x32xf32>
      tpu.vector_store %arg29[%c0_136, %c0_137], %283 {strides = array<i32>} : memref<8x32xf32, #tpu.memory_space<vmem>>, vector<8x32xf32>,
    } else {
    }
    %c0 = arith.constant 0 : index
    %c0_1 = arith.constant 0 : index
    %3 = vector.load %arg29[%c0, %c0_1] : memref<8x32xf32, #tpu.memory_space<vmem>>, vector<8x32xf32>
    %c0_2 = arith.constant 0 : index
    %c0_3 = arith.constant 0 : index
    %c0_4 = arith.constant 0 : index
    %4 = vector.load %arg3[%c0_2, %c0_3, %c0_4] : memref<1x16x32xbf16, #tpu.memory_space<vmem>>, vector<1x16x32xbf16>
    %5 = vector.shape_cast %4 : vector<1x16x32xbf16> to vector<16x32xbf16>
    %c0_5 = arith.constant 0 : index
    %c0_6 = arith.constant 0 : index
    %c0_7 = arith.constant 0 : index
    %6 = vector.load %arg4[%c0_5, %c0_6, %c0_7] : memref<1x8x8xbf16, #tpu.memory_space<vmem>>, vector<1x8x8xbf16>
    %7 = vector.shape_cast %6 : vector<1x8x8xbf16> to vector<8x8xbf16>
    %8 = arith.extf %7 : vector<8x8xbf16> to vector<8x8xf32>
    %9 = arith.truncf %3 : vector<8x32xf32> to vector<8x32xbf16>
    %c0_8 = arith.constant 0 : index
    %c0_9 = arith.constant 0 : index
    %c0_10 = arith.constant 0 : index
    %10 = vector.load %arg5[%c0_8, %c0_9, %c0_10] : memref<1x32x32xbf16, #tpu.memory_space<vmem>>, vector<1x32x32xbf16>
    %11 = vector.shape_cast %10 : vector<1x32x32xbf16> to vector<32x32xbf16>
    %cst = arith.constant dense<0.000000e+00> : vector<8x32xf32>
    %12 = tpu.matmul %9, %11, %cst {dimension_numbers = #tpu.dot_dimension_numbers<[1], [0], [0], [1], [0, 0, 1, 1], [], []>} : vector<8x32xbf16>, vector<32x32xbf16>, vector<8x32xf32> -> vector<8x32xf32>
    %c0_11 = arith.constant 0 : index
    %c0_12 = arith.constant 0 : index
    %c0_13 = arith.constant 0 : index
    %13 = vector.load %arg6[%c0_11, %c0_12, %c0_13] : memref<1x1x32xf32, #tpu.memory_space<vmem>>, vector<1x1x32xf32>
    %14 = vector.shape_cast %13 : vector<1x1x32xf32> to vector<1x32xf32>
    %15 = vector.broadcast %14 : vector<1x32xf32> to vector<8x32xf32>
    %16 = arith.addf %12, %15 : vector<8x32xf32>
    %c0_14 = arith.constant 0 : index
    %c0_15 = arith.constant 0 : index
    %c0_16 = arith.constant 0 : index
    %17 = vector.load %arg7[%c0_14, %c0_15, %c0_16] : memref<1x32x32xbf16, #tpu.memory_space<vmem>>, vector<1x32x32xbf16>
    %18 = vector.shape_cast %17 : vector<1x32x32xbf16> to vector<32x32xbf16>
    %cst_17 = arith.constant dense<0.000000e+00> : vector<8x32xf32>
    %19 = tpu.matmul %9, %18, %cst_17 {dimension_numbers = #tpu.dot_dimension_numbers<[1], [0], [0], [1], [0, 0, 1, 1], [], []>} : vector<8x32xbf16>, vector<32x32xbf16>, vector<8x32xf32> -> vector<8x32xf32>
    %c0_18 = arith.constant 0 : index
    %c0_19 = arith.constant 0 : index
    %c0_20 = arith.constant 0 : index
    %20 = vector.load %arg8[%c0_18, %c0_19, %c0_20] : memref<1x1x32xf32, #tpu.memory_space<vmem>>, vector<1x1x32xf32>
    %21 = vector.shape_cast %20 : vector<1x1x32xf32> to vector<1x32xf32>
    %22 = vector.broadcast %21 : vector<1x32xf32> to vector<8x32xf32>
    %23 = arith.addf %19, %22 : vector<8x32xf32>
    %c0_21 = arith.constant 0 : index
    %c0_22 = arith.constant 0 : index
    %c0_23 = arith.constant 0 : index
    %24 = vector.load %arg9[%c0_21, %c0_22, %c0_23] : memref<1x32x32xbf16, #tpu.memory_space<vmem>>, vector<1x32x32xbf16>
    %25 = vector.shape_cast %24 : vector<1x32x32xbf16> to vector<32x32xbf16>
    %cst_24 = arith.constant dense<0.000000e+00> : vector<8x32xf32>
    %26 = tpu.matmul %9, %25, %cst_24 {dimension_numbers = #tpu.dot_dimension_numbers<[1], [0], [0], [1], [0, 0, 1, 1], [], []>} : vector<8x32xbf16>, vector<32x32xbf16>, vector<8x32xf32> -> vector<8x32xf32>
    %c0_25 = arith.constant 0 : index
    %c0_26 = arith.constant 0 : index
    %c0_27 = arith.constant 0 : index
    %27 = vector.load %arg10[%c0_25, %c0_26, %c0_27] : memref<1x1x32xf32, #tpu.memory_space<vmem>>, vector<1x1x32xf32>
    %28 = vector.shape_cast %27 : vector<1x1x32xf32> to vector<1x32xf32>
    %29 = vector.broadcast %28 : vector<1x32xf32> to vector<8x32xf32>
    %30 = arith.addf %26, %29 : vector<8x32xf32>
    %31 = arith.truncf %16 : vector<8x32xf32> to vector<8x32xbf16>
    %32 = arith.truncf %23 : vector<8x32xf32> to vector<8x32xbf16>
    %33 = arith.truncf %30 : vector<8x32xf32> to vector<8x32xbf16>
    %34 = vector.extract_strided_slice %31 {offsets = [0, 0], sizes = [8, 8], strides = [1, 1]} : vector<8x32xbf16> to vector<8x8xbf16>
    %35 = vector.extract_strided_slice %32 {offsets = [0, 0], sizes = [8, 8], strides = [1, 1]} : vector<8x32xbf16> to vector<8x8xbf16>
    %cst_28 = arith.constant dense<0.000000e+00> : vector<8x8xf32>
    %36 = tpu.matmul %34, %35, %cst_28 {dimension_numbers = #tpu.dot_dimension_numbers<[1], [1], [0], [0], [0, 0, 1, 0], [], []>} : vector<8x8xbf16>, vector<8x8xbf16>, vector<8x8xf32> -> vector<8x8xf32>
    %37 = arith.addf %36, %8 : vector<8x8xf32>
    %cst_29 = arith.constant dense<0xFF800000> : vector<8xf32>
    %38 = vector.multi_reduction <maximumf>, %37, %cst_29 [1] : vector<8x8xf32> to vector<8xf32>
    %39 = vector.shape_cast %38 : vector<8xf32> to vector<8x1xf32>
    %40 = vector.broadcast %39 : vector<8x1xf32> to vector<8x8xf32>
    %41 = arith.subf %37, %40 : vector<8x8xf32>
    %42 = math.exp %41 : vector<8x8xf32>
    %cst_30 = arith.constant dense<0.000000e+00> : vector<8xf32>
    %43 = vector.multi_reduction <add>, %42, %cst_30 [1] : vector<8x8xf32> to vector<8xf32>
    %44 = vector.shape_cast %43 : vector<8xf32> to vector<8x1xf32>
    %45 = tpu.reciprocal %44 {approx = true} : vector<8x1xf32> -> vector<8x1xf32>
    %46 = vector.broadcast %45 : vector<8x1xf32> to vector<8x8xf32>
    %47 = arith.mulf %42, %46 : vector<8x8xf32>
    %48 = arith.truncf %47 : vector<8x8xf32> to vector<8x8xbf16>
    %49 = vector.extract_strided_slice %33 {offsets = [0, 0], sizes = [8, 8], strides = [1, 1]} : vector<8x32xbf16> to vector<8x8xbf16>
    %cst_31 = arith.constant dense<0.000000e+00> : vector<8x8xf32>
    %50 = tpu.matmul %48, %49, %cst_31 {dimension_numbers = #tpu.dot_dimension_numbers<[1], [0], [0], [1], [0, 0, 1, 1], [], []>} : vector<8x8xbf16>, vector<8x8xbf16>, vector<8x8xf32> -> vector<8x8xf32>
    %51 = vector.extract_strided_slice %31 {offsets = [0, 8], sizes = [8, 8], strides = [1, 1]} : vector<8x32xbf16> to vector<8x8xbf16>
    %52 = vector.extract_strided_slice %32 {offsets = [0, 8], sizes = [8, 8], strides = [1, 1]} : vector<8x32xbf16> to vector<8x8xbf16>
    %cst_32 = arith.constant dense<0.000000e+00> : vector<8x8xf32>
    %53 = tpu.matmul %51, %52, %cst_32 {dimension_numbers = #tpu.dot_dimension_numbers<[1], [1], [0], [0], [0, 0, 1, 0], [], []>} : vector<8x8xbf16>, vector<8x8xbf16>, vector<8x8xf32> -> vector<8x8xf32>
    %54 = arith.addf %53, %8 : vector<8x8xf32>
    %cst_33 = arith.constant dense<0xFF800000> : vector<8xf32>
    %55 = vector.multi_reduction <maximumf>, %54, %cst_33 [1] : vector<8x8xf32> to vector<8xf32>
    %56 = vector.shape_cast %55 : vector<8xf32> to vector<8x1xf32>
    %57 = vector.broadcast %56 : vector<8x1xf32> to vector<8x8xf32>
    %58 = arith.subf %54, %57 : vector<8x8xf32>
    %59 = math.exp %58 : vector<8x8xf32>
    %cst_34 = arith.constant dense<0.000000e+00> : vector<8xf32>
    %60 = vector.multi_reduction <add>, %59, %cst_34 [1] : vector<8x8xf32> to vector<8xf32>
    %61 = vector.shape_cast %60 : vector<8xf32> to vector<8x1xf32>
    %62 = tpu.reciprocal %61 {approx = true} : vector<8x1xf32> -> vector<8x1xf32>
    %63 = vector.broadcast %62 : vector<8x1xf32> to vector<8x8xf32>
    %64 = arith.mulf %59, %63 : vector<8x8xf32>
    %65 = arith.truncf %64 : vector<8x8xf32> to vector<8x8xbf16>
    %66 = vector.extract_strided_slice %33 {offsets = [0, 8], sizes = [8, 8], strides = [1, 1]} : vector<8x32xbf16> to vector<8x8xbf16>
    %cst_35 = arith.constant dense<0.000000e+00> : vector<8x8xf32>
    %67 = tpu.matmul %65, %66, %cst_35 {dimension_numbers = #tpu.dot_dimension_numbers<[1], [0], [0], [1], [0, 0, 1, 1], [], []>} : vector<8x8xbf16>, vector<8x8xbf16>, vector<8x8xf32> -> vector<8x8xf32>
    %68 = vector.extract_strided_slice %31 {offsets = [0, 16], sizes = [8, 8], strides = [1, 1]} : vector<8x32xbf16> to vector<8x8xbf16>
    %69 = vector.extract_strided_slice %32 {offsets = [0, 16], sizes = [8, 8], strides = [1, 1]} : vector<8x32xbf16> to vector<8x8xbf16>
    %cst_36 = arith.constant dense<0.000000e+00> : vector<8x8xf32>
    %70 = tpu.matmul %68, %69, %cst_36 {dimension_numbers = #tpu.dot_dimension_numbers<[1], [1], [0], [0], [0, 0, 1, 0], [], []>} : vector<8x8xbf16>, vector<8x8xbf16>, vector<8x8xf32> -> vector<8x8xf32>
    %71 = arith.addf %70, %8 : vector<8x8xf32>
    %cst_37 = arith.constant dense<0xFF800000> : vector<8xf32>
    %72 = vector.multi_reduction <maximumf>, %71, %cst_37 [1] : vector<8x8xf32> to vector<8xf32>
    %73 = vector.shape_cast %72 : vector<8xf32> to vector<8x1xf32>
    %74 = vector.broadcast %73 : vector<8x1xf32> to vector<8x8xf32>
    %75 = arith.subf %71, %74 : vector<8x8xf32>
    %76 = math.exp %75 : vector<8x8xf32>
    %cst_38 = arith.constant dense<0.000000e+00> : vector<8xf32>
    %77 = vector.multi_reduction <add>, %76, %cst_38 [1] : vector<8x8xf32> to vector<8xf32>
    %78 = vector.shape_cast %77 : vector<8xf32> to vector<8x1xf32>
    %79 = tpu.reciprocal %78 {approx = true} : vector<8x1xf32> -> vector<8x1xf32>
    %80 = vector.broadcast %79 : vector<8x1xf32> to vector<8x8xf32>
    %81 = arith.mulf %76, %80 : vector<8x8xf32>
    %82 = arith.truncf %81 : vector<8x8xf32> to vector<8x8xbf16>
    %83 = vector.extract_strided_slice %33 {offsets = [0, 16], sizes = [8, 8], strides = [1, 1]} : vector<8x32xbf16> to vector<8x8xbf16>
    %cst_39 = arith.constant dense<0.000000e+00> : vector<8x8xf32>
    %84 = tpu.matmul %82, %83, %cst_39 {dimension_numbers = #tpu.dot_dimension_numbers<[1], [0], [0], [1], [0, 0, 1, 1], [], []>} : vector<8x8xbf16>, vector<8x8xbf16>, vector<8x8xf32> -> vector<8x8xf32>
    %85 = vector.extract_strided_slice %31 {offsets = [0, 24], sizes = [8, 8], strides = [1, 1]} : vector<8x32xbf16> to vector<8x8xbf16>
    %86 = vector.extract_strided_slice %32 {offsets = [0, 24], sizes = [8, 8], strides = [1, 1]} : vector<8x32xbf16> to vector<8x8xbf16>
    %cst_40 = arith.constant dense<0.000000e+00> : vector<8x8xf32>
    %87 = tpu.matmul %85, %86, %cst_40 {dimension_numbers = #tpu.dot_dimension_numbers<[1], [1], [0], [0], [0, 0, 1, 0], [], []>} : vector<8x8xbf16>, vector<8x8xbf16>, vector<8x8xf32> -> vector<8x8xf32>
    %88 = arith.addf %87, %8 : vector<8x8xf32>
    %cst_41 = arith.constant dense<0xFF800000> : vector<8xf32>
    %89 = vector.multi_reduction <maximumf>, %88, %cst_41 [1] : vector<8x8xf32> to vector<8xf32>
    %90 = vector.shape_cast %89 : vector<8xf32> to vector<8x1xf32>
    %91 = vector.broadcast %90 : vector<8x1xf32> to vector<8x8xf32>
    %92 = arith.subf %88, %91 : vector<8x8xf32>
    %93 = math.exp %92 : vector<8x8xf32>
    %cst_42 = arith.constant dense<0.000000e+00> : vector<8xf32>
    %94 = vector.multi_reduction <add>, %93, %cst_42 [1] : vector<8x8xf32> to vector<8xf32>
    %95 = vector.shape_cast %94 : vector<8xf32> to vector<8x1xf32>
    %96 = tpu.reciprocal %95 {approx = true} : vector<8x1xf32> -> vector<8x1xf32>
    %97 = vector.broadcast %96 : vector<8x1xf32> to vector<8x8xf32>
    %98 = arith.mulf %93, %97 : vector<8x8xf32>
    %99 = arith.truncf %98 : vector<8x8xf32> to vector<8x8xbf16>
    %100 = vector.extract_strided_slice %33 {offsets = [0, 24], sizes = [8, 8], strides = [1, 1]} : vector<8x32xbf16> to vector<8x8xbf16>
    %cst_43 = arith.constant dense<0.000000e+00> : vector<8x8xf32>
    %101 = tpu.matmul %99, %100, %cst_43 {dimension_numbers = #tpu.dot_dimension_numbers<[1], [0], [0], [1], [0, 0, 1, 1], [], []>} : vector<8x8xbf16>, vector<8x8xbf16>, vector<8x8xf32> -> vector<8x8xf32>
    %102 = tpu.concatenate %50, %67, %84, %101 in 1 : vector<8x8xf32>, vector<8x8xf32>, vector<8x8xf32>, vector<8x8xf32> -> vector<8x32xf32>
    %103 = arith.truncf %102 : vector<8x32xf32> to vector<8x32xbf16>
    %c0_44 = arith.constant 0 : index
    %c0_45 = arith.constant 0 : index
    %c0_46 = arith.constant 0 : index
    %104 = vector.load %arg11[%c0_44, %c0_45, %c0_46] : memref<1x32x32xbf16, #tpu.memory_space<vmem>>, vector<1x32x32xbf16>
    %105 = vector.shape_cast %104 : vector<1x32x32xbf16> to vector<32x32xbf16>
    %cst_47 = arith.constant dense<0.000000e+00> : vector<8x32xf32>
    %106 = tpu.matmul %103, %105, %cst_47 {dimension_numbers = #tpu.dot_dimension_numbers<[1], [0], [0], [1], [0, 0, 1, 1], [], []>} : vector<8x32xbf16>, vector<32x32xbf16>, vector<8x32xf32> -> vector<8x32xf32>
    %c0_48 = arith.constant 0 : index
    %c0_49 = arith.constant 0 : index
    %c0_50 = arith.constant 0 : index
    %107 = vector.load %arg12[%c0_48, %c0_49, %c0_50] : memref<1x1x32xf32, #tpu.memory_space<vmem>>, vector<1x1x32xf32>
    %108 = vector.shape_cast %107 : vector<1x1x32xf32> to vector<1x32xf32>
    %109 = vector.broadcast %108 : vector<1x32xf32> to vector<8x32xf32>
    %110 = arith.addf %106, %109 : vector<8x32xf32>
    %111 = arith.addf %3, %110 : vector<8x32xf32>
    %c0_51 = arith.constant 0 : index
    %c0_52 = arith.constant 0 : index
    %c0_53 = arith.constant 0 : index
    %112 = vector.load %arg13[%c0_51, %c0_52, %c0_53] : memref<1x1x32xf32, #tpu.memory_space<vmem>>, vector<1x1x32xf32>
    %113 = vector.shape_cast %112 : vector<1x1x32xf32> to vector<1x32xf32>
    %114 = arith.mulf %111, %111 : vector<8x32xf32>
    %cst_54 = arith.constant dense<0.000000e+00> : vector<8xf32>
    %115 = vector.multi_reduction <add>, %114, %cst_54 [1] : vector<8x32xf32> to vector<8xf32>
    %116 = vector.shape_cast %115 : vector<8xf32> to vector<8x1xf32>
    %cst_55 = arith.constant 3.200000e+01 : f32
    %117 = vector.broadcast %cst_55 : f32 to vector<8x1xf32>
    %118 = arith.divf %116, %117 : vector<8x1xf32>
    %cst_56 = arith.constant 1.1920929E-7 : f32
    %119 = vector.broadcast %cst_56 : f32 to vector<8x1xf32>
    %120 = arith.addf %118, %119 : vector<8x1xf32>
    %121 = math.rsqrt %120 : vector<8x1xf32>
    %122 = vector.broadcast %121 : vector<8x1xf32> to vector<8x32xf32>
    %123 = arith.mulf %111, %122 : vector<8x32xf32>
    %124 = vector.broadcast %113 : vector<1x32xf32> to vector<8x32xf32>
    %125 = arith.mulf %123, %124 : vector<8x32xf32>
    %126 = arith.truncf %125 : vector<8x32xf32> to vector<8x32xbf16>
    %c0_57 = arith.constant 0 : index
    %c0_58 = arith.constant 0 : index
    %c0_59 = arith.constant 0 : index
    %127 = vector.load %arg14[%c0_57, %c0_58, %c0_59] : memref<1x32x32xbf16, #tpu.memory_space<vmem>>, vector<1x32x32xbf16>
    %128 = vector.shape_cast %127 : vector<1x32x32xbf16> to vector<32x32xbf16>
    %cst_60 = arith.constant dense<0.000000e+00> : vector<8x32xf32>
    %129 = tpu.matmul %126, %128, %cst_60 {dimension_numbers = #tpu.dot_dimension_numbers<[1], [0], [0], [1], [0, 0, 1, 1], [], []>} : vector<8x32xbf16>, vector<32x32xbf16>, vector<8x32xf32> -> vector<8x32xf32>
    %c0_61 = arith.constant 0 : index
    %c0_62 = arith.constant 0 : index
    %c0_63 = arith.constant 0 : index
    %130 = vector.load %arg15[%c0_61, %c0_62, %c0_63] : memref<1x1x32xf32, #tpu.memory_space<vmem>>, vector<1x1x32xf32>
    %131 = vector.shape_cast %130 : vector<1x1x32xf32> to vector<1x32xf32>
    %132 = vector.broadcast %131 : vector<1x32xf32> to vector<8x32xf32>
    %133 = arith.addf %129, %132 : vector<8x32xf32>
    %c0_64 = arith.constant 0 : index
    %c0_65 = arith.constant 0 : index
    %c0_66 = arith.constant 0 : index
    %134 = vector.load %arg16[%c0_64, %c0_65, %c0_66] : memref<1x32x32xbf16, #tpu.memory_space<vmem>>, vector<1x32x32xbf16>
    %135 = vector.shape_cast %134 : vector<1x32x32xbf16> to vector<32x32xbf16>
    %cst_67 = arith.constant dense<0.000000e+00> : vector<16x32xf32>
    %136 = tpu.matmul %5, %135, %cst_67 {dimension_numbers = #tpu.dot_dimension_numbers<[1], [0], [0], [1], [0, 0, 1, 1], [], []>} : vector<16x32xbf16>, vector<32x32xbf16>, vector<16x32xf32> -> vector<16x32xf32>
    %c0_68 = arith.constant 0 : index
    %c0_69 = arith.constant 0 : index
    %c0_70 = arith.constant 0 : index
    %137 = vector.load %arg17[%c0_68, %c0_69, %c0_70] : memref<1x1x32xf32, #tpu.memory_space<vmem>>, vector<1x1x32xf32>
    %138 = vector.shape_cast %137 : vector<1x1x32xf32> to vector<1x32xf32>
    %139 = vector.broadcast %138 : vector<1x32xf32> to vector<16x32xf32>
    %140 = arith.addf %136, %139 : vector<16x32xf32>
    %c0_71 = arith.constant 0 : index
    %c0_72 = arith.constant 0 : index
    %c0_73 = arith.constant 0 : index
    %141 = vector.load %arg18[%c0_71, %c0_72, %c0_73] : memref<1x32x32xbf16, #tpu.memory_space<vmem>>, vector<1x32x32xbf16>
    %142 = vector.shape_cast %141 : vector<1x32x32xbf16> to vector<32x32xbf16>
    %cst_74 = arith.constant dense<0.000000e+00> : vector<16x32xf32>
    %143 = tpu.matmul %5, %142, %cst_74 {dimension_numbers = #tpu.dot_dimension_numbers<[1], [0], [0], [1], [0, 0, 1, 1], [], []>} : vector<16x32xbf16>, vector<32x32xbf16>, vector<16x32xf32> -> vector<16x32xf32>
    %c0_75 = arith.constant 0 : index
    %c0_76 = arith.constant 0 : index
    %c0_77 = arith.constant 0 : index
    %144 = vector.load %arg19[%c0_75, %c0_76, %c0_77] : memref<1x1x32xf32, #tpu.memory_space<vmem>>, vector<1x1x32xf32>
    %145 = vector.shape_cast %144 : vector<1x1x32xf32> to vector<1x32xf32>
    %146 = vector.broadcast %145 : vector<1x32xf32> to vector<16x32xf32>
    %147 = arith.addf %143, %146 : vector<16x32xf32>
    %148 = arith.truncf %133 : vector<8x32xf32> to vector<8x32xbf16>
    %149 = arith.truncf %140 : vector<16x32xf32> to vector<16x32xbf16>
    %150 = arith.truncf %147 : vector<16x32xf32> to vector<16x32xbf16>
    %151 = vector.extract_strided_slice %148 {offsets = [0, 0], sizes = [8, 8], strides = [1, 1]} : vector<8x32xbf16> to vector<8x8xbf16>
    %152 = vector.extract_strided_slice %149 {offsets = [0, 0], sizes = [16, 8], strides = [1, 1]} : vector<16x32xbf16> to vector<16x8xbf16>
    %cst_78 = arith.constant dense<0.000000e+00> : vector<8x16xf32>
    %153 = tpu.matmul %151, %152, %cst_78 {dimension_numbers = #tpu.dot_dimension_numbers<[1], [1], [0], [0], [0, 0, 1, 0], [], []>} : vector<8x8xbf16>, vector<16x8xbf16>, vector<8x16xf32> -> vector<8x16xf32>
    %cst_79 = arith.constant dense<0xFF800000> : vector<8xf32>
    %154 = vector.multi_reduction <maximumf>, %153, %cst_79 [1] : vector<8x16xf32> to vector<8xf32>
    %155 = vector.shape_cast %154 : vector<8xf32> to vector<8x1xf32>
    %156 = vector.broadcast %155 : vector<8x1xf32> to vector<8x16xf32>
    %157 = arith.subf %153, %156 : vector<8x16xf32>
    %158 = math.exp %157 : vector<8x16xf32>
    %cst_80 = arith.constant dense<0.000000e+00> : vector<8xf32>
    %159 = vector.multi_reduction <add>, %158, %cst_80 [1] : vector<8x16xf32> to vector<8xf32>
    %160 = vector.shape_cast %159 : vector<8xf32> to vector<8x1xf32>
    %161 = tpu.reciprocal %160 {approx = true} : vector<8x1xf32> -> vector<8x1xf32>
    %162 = vector.broadcast %161 : vector<8x1xf32> to vector<8x16xf32>
    %163 = arith.mulf %158, %162 : vector<8x16xf32>
    %164 = arith.truncf %163 : vector<8x16xf32> to vector<8x16xbf16>
    %165 = vector.extract_strided_slice %150 {offsets = [0, 0], sizes = [16, 8], strides = [1, 1]} : vector<16x32xbf16> to vector<16x8xbf16>
    %cst_81 = arith.constant dense<0.000000e+00> : vector<8x8xf32>
    %166 = tpu.matmul %164, %165, %cst_81 {dimension_numbers = #tpu.dot_dimension_numbers<[1], [0], [0], [1], [0, 0, 1, 1], [], []>} : vector<8x16xbf16>, vector<16x8xbf16>, vector<8x8xf32> -> vector<8x8xf32>
    %167 = vector.extract_strided_slice %148 {offsets = [0, 8], sizes = [8, 8], strides = [1, 1]} : vector<8x32xbf16> to vector<8x8xbf16>
    %168 = vector.extract_strided_slice %149 {offsets = [0, 8], sizes = [16, 8], strides = [1, 1]} : vector<16x32xbf16> to vector<16x8xbf16>
    %cst_82 = arith.constant dense<0.000000e+00> : vector<8x16xf32>
    %169 = tpu.matmul %167, %168, %cst_82 {dimension_numbers = #tpu.dot_dimension_numbers<[1], [1], [0], [0], [0, 0, 1, 0], [], []>} : vector<8x8xbf16>, vector<16x8xbf16>, vector<8x16xf32> -> vector<8x16xf32>
    %cst_83 = arith.constant dense<0xFF800000> : vector<8xf32>
    %170 = vector.multi_reduction <maximumf>, %169, %cst_83 [1] : vector<8x16xf32> to vector<8xf32>
    %171 = vector.shape_cast %170 : vector<8xf32> to vector<8x1xf32>
    %172 = vector.broadcast %171 : vector<8x1xf32> to vector<8x16xf32>
    %173 = arith.subf %169, %172 : vector<8x16xf32>
    %174 = math.exp %173 : vector<8x16xf32>
    %cst_84 = arith.constant dense<0.000000e+00> : vector<8xf32>
    %175 = vector.multi_reduction <add>, %174, %cst_84 [1] : vector<8x16xf32> to vector<8xf32>
    %176 = vector.shape_cast %175 : vector<8xf32> to vector<8x1xf32>
    %177 = tpu.reciprocal %176 {approx = true} : vector<8x1xf32> -> vector<8x1xf32>
    %178 = vector.broadcast %177 : vector<8x1xf32> to vector<8x16xf32>
    %179 = arith.mulf %174, %178 : vector<8x16xf32>
    %180 = arith.truncf %179 : vector<8x16xf32> to vector<8x16xbf16>
    %181 = vector.extract_strided_slice %150 {offsets = [0, 8], sizes = [16, 8], strides = [1, 1]} : vector<16x32xbf16> to vector<16x8xbf16>
    %cst_85 = arith.constant dense<0.000000e+00> : vector<8x8xf32>
    %182 = tpu.matmul %180, %181, %cst_85 {dimension_numbers = #tpu.dot_dimension_numbers<[1], [0], [0], [1], [0, 0, 1, 1], [], []>} : vector<8x16xbf16>, vector<16x8xbf16>, vector<8x8xf32> -> vector<8x8xf32>
    %183 = vector.extract_strided_slice %148 {offsets = [0, 16], sizes = [8, 8], strides = [1, 1]} : vector<8x32xbf16> to vector<8x8xbf16>
    %184 = vector.extract_strided_slice %149 {offsets = [0, 16], sizes = [16, 8], strides = [1, 1]} : vector<16x32xbf16> to vector<16x8xbf16>
    %cst_86 = arith.constant dense<0.000000e+00> : vector<8x16xf32>
    %185 = tpu.matmul %183, %184, %cst_86 {dimension_numbers = #tpu.dot_dimension_numbers<[1], [1], [0], [0], [0, 0, 1, 0], [], []>} : vector<8x8xbf16>, vector<16x8xbf16>, vector<8x16xf32> -> vector<8x16xf32>
    %cst_87 = arith.constant dense<0xFF800000> : vector<8xf32>
    %186 = vector.multi_reduction <maximumf>, %185, %cst_87 [1] : vector<8x16xf32> to vector<8xf32>
    %187 = vector.shape_cast %186 : vector<8xf32> to vector<8x1xf32>
    %188 = vector.broadcast %187 : vector<8x1xf32> to vector<8x16xf32>
    %189 = arith.subf %185, %188 : vector<8x16xf32>
    %190 = math.exp %189 : vector<8x16xf32>
    %cst_88 = arith.constant dense<0.000000e+00> : vector<8xf32>
    %191 = vector.multi_reduction <add>, %190, %cst_88 [1] : vector<8x16xf32> to vector<8xf32>
    %192 = vector.shape_cast %191 : vector<8xf32> to vector<8x1xf32>
    %193 = tpu.reciprocal %192 {approx = true} : vector<8x1xf32> -> vector<8x1xf32>
    %194 = vector.broadcast %193 : vector<8x1xf32> to vector<8x16xf32>
    %195 = arith.mulf %190, %194 : vector<8x16xf32>
    %196 = arith.truncf %195 : vector<8x16xf32> to vector<8x16xbf16>
    %197 = vector.extract_strided_slice %150 {offsets = [0, 16], sizes = [16, 8], strides = [1, 1]} : vector<16x32xbf16> to vector<16x8xbf16>
    %cst_89 = arith.constant dense<0.000000e+00> : vector<8x8xf32>
    %198 = tpu.matmul %196, %197, %cst_89 {dimension_numbers = #tpu.dot_dimension_numbers<[1], [0], [0], [1], [0, 0, 1, 1], [], []>} : vector<8x16xbf16>, vector<16x8xbf16>, vector<8x8xf32> -> vector<8x8xf32>
    %199 = vector.extract_strided_slice %148 {offsets = [0, 24], sizes = [8, 8], strides = [1, 1]} : vector<8x32xbf16> to vector<8x8xbf16>
    %200 = vector.extract_strided_slice %149 {offsets = [0, 24], sizes = [16, 8], strides = [1, 1]} : vector<16x32xbf16> to vector<16x8xbf16>
    %cst_90 = arith.constant dense<0.000000e+00> : vector<8x16xf32>
    %201 = tpu.matmul %199, %200, %cst_90 {dimension_numbers = #tpu.dot_dimension_numbers<[1], [1], [0], [0], [0, 0, 1, 0], [], []>} : vector<8x8xbf16>, vector<16x8xbf16>, vector<8x16xf32> -> vector<8x16xf32>
    %cst_91 = arith.constant dense<0xFF800000> : vector<8xf32>
    %202 = vector.multi_reduction <maximumf>, %201, %cst_91 [1] : vector<8x16xf32> to vector<8xf32>
    %203 = vector.shape_cast %202 : vector<8xf32> to vector<8x1xf32>
    %204 = vector.broadcast %203 : vector<8x1xf32> to vector<8x16xf32>
    %205 = arith.subf %201, %204 : vector<8x16xf32>
    %206 = math.exp %205 : vector<8x16xf32>
    %cst_92 = arith.constant dense<0.000000e+00> : vector<8xf32>
    %207 = vector.multi_reduction <add>, %206, %cst_92 [1] : vector<8x16xf32> to vector<8xf32>
    %208 = vector.shape_cast %207 : vector<8xf32> to vector<8x1xf32>
    %209 = tpu.reciprocal %208 {approx = true} : vector<8x1xf32> -> vector<8x1xf32>
    %210 = vector.broadcast %209 : vector<8x1xf32> to vector<8x16xf32>
    %211 = arith.mulf %206, %210 : vector<8x16xf32>
    %212 = arith.truncf %211 : vector<8x16xf32> to vector<8x16xbf16>
    %213 = vector.extract_strided_slice %150 {offsets = [0, 24], sizes = [16, 8], strides = [1, 1]} : vector<16x32xbf16> to vector<16x8xbf16>
    %cst_93 = arith.constant dense<0.000000e+00> : vector<8x8xf32>
    %214 = tpu.matmul %212, %213, %cst_93 {dimension_numbers = #tpu.dot_dimension_numbers<[1], [0], [0], [1], [0, 0, 1, 1], [], []>} : vector<8x16xbf16>, vector<16x8xbf16>, vector<8x8xf32> -> vector<8x8xf32>
    %215 = tpu.concatenate %166, %182, %198, %214 in 1 : vector<8x8xf32>, vector<8x8xf32>, vector<8x8xf32>, vector<8x8xf32> -> vector<8x32xf32>
    %216 = arith.truncf %215 : vector<8x32xf32> to vector<8x32xbf16>
    %c0_94 = arith.constant 0 : index
    %c0_95 = arith.constant 0 : index
    %c0_96 = arith.constant 0 : index
    %217 = vector.load %arg20[%c0_94, %c0_95, %c0_96] : memref<1x32x32xbf16, #tpu.memory_space<vmem>>, vector<1x32x32xbf16>
    %218 = vector.shape_cast %217 : vector<1x32x32xbf16> to vector<32x32xbf16>
    %cst_97 = arith.constant dense<0.000000e+00> : vector<8x32xf32>
    %219 = tpu.matmul %216, %218, %cst_97 {dimension_numbers = #tpu.dot_dimension_numbers<[1], [0], [0], [1], [0, 0, 1, 1], [], []>} : vector<8x32xbf16>, vector<32x32xbf16>, vector<8x32xf32> -> vector<8x32xf32>
    %c0_98 = arith.constant 0 : index
    %c0_99 = arith.constant 0 : index
    %c0_100 = arith.constant 0 : index
    %220 = vector.load %arg21[%c0_98, %c0_99, %c0_100] : memref<1x1x32xf32, #tpu.memory_space<vmem>>, vector<1x1x32xf32>
    %221 = vector.shape_cast %220 : vector<1x1x32xf32> to vector<1x32xf32>
    %222 = vector.broadcast %221 : vector<1x32xf32> to vector<8x32xf32>
    %223 = arith.addf %219, %222 : vector<8x32xf32>
    %224 = arith.addf %125, %223 : vector<8x32xf32>
    %c0_101 = arith.constant 0 : index
    %c0_102 = arith.constant 0 : index
    %c0_103 = arith.constant 0 : index
    %225 = vector.load %arg22[%c0_101, %c0_102, %c0_103] : memref<1x1x32xf32, #tpu.memory_space<vmem>>, vector<1x1x32xf32>
    %226 = vector.shape_cast %225 : vector<1x1x32xf32> to vector<1x32xf32>
    %227 = arith.mulf %224, %224 : vector<8x32xf32>
    %cst_104 = arith.constant dense<0.000000e+00> : vector<8xf32>
    %228 = vector.multi_reduction <add>, %227, %cst_104 [1] : vector<8x32xf32> to vector<8xf32>
    %229 = vector.shape_cast %228 : vector<8xf32> to vector<8x1xf32>
    %cst_105 = arith.constant 3.200000e+01 : f32
    %230 = vector.broadcast %cst_105 : f32 to vector<8x1xf32>
    %231 = arith.divf %229, %230 : vector<8x1xf32>
    %cst_106 = arith.constant 1.1920929E-7 : f32
    %232 = vector.broadcast %cst_106 : f32 to vector<8x1xf32>
    %233 = arith.addf %231, %232 : vector<8x1xf32>
    %234 = math.rsqrt %233 : vector<8x1xf32>
    %235 = vector.broadcast %234 : vector<8x1xf32> to vector<8x32xf32>
    %236 = arith.mulf %224, %235 : vector<8x32xf32>
    %237 = vector.broadcast %226 : vector<1x32xf32> to vector<8x32xf32>
    %238 = arith.mulf %236, %237 : vector<8x32xf32>
    %239 = arith.truncf %238 : vector<8x32xf32> to vector<8x32xbf16>
    %c0_107 = arith.constant 0 : index
    %c0_108 = arith.constant 0 : index
    %c0_109 = arith.constant 0 : index
    %240 = vector.load %arg23[%c0_107, %c0_108, %c0_109] : memref<1x32x128xbf16, #tpu.memory_space<vmem>>, vector<1x32x128xbf16>
    %241 = vector.shape_cast %240 : vector<1x32x128xbf16> to vector<32x128xbf16>
    %cst_110 = arith.constant dense<0.000000e+00> : vector<8x128xf32>
    %242 = tpu.matmul %239, %241, %cst_110 {dimension_numbers = #tpu.dot_dimension_numbers<[1], [0], [0], [1], [0, 0, 1, 1], [], []>} : vector<8x32xbf16>, vector<32x128xbf16>, vector<8x128xf32> -> vector<8x128xf32>
    %c0_111 = arith.constant 0 : index
    %c0_112 = arith.constant 0 : index
    %c0_113 = arith.constant 0 : index
    %243 = vector.load %arg24[%c0_111, %c0_112, %c0_113] : memref<1x1x128xf32, #tpu.memory_space<vmem>>, vector<1x1x128xf32>
    %244 = vector.shape_cast %243 : vector<1x1x128xf32> to vector<1x128xf32>
    %245 = vector.broadcast %244 : vector<1x128xf32> to vector<8x128xf32>
    %246 = arith.addf %242, %245 : vector<8x128xf32>
    %cst_114 = arith.constant 5.000000e-01 : f32
    %247 = vector.broadcast %cst_114 : f32 to vector<8x128xf32>
    %248 = arith.mulf %247, %246 : vector<8x128xf32>
    %cst_115 = arith.constant 1.41421354 : f32
    %249 = vector.broadcast %cst_115 : f32 to vector<8x128xf32>
    %250 = arith.divf %246, %249 : vector<8x128xf32>
    %251 = math.erf %250 : vector<8x128xf32>
    %cst_116 = arith.constant 1.000000e+00 : f32
    %252 = vector.broadcast %cst_116 : f32 to vector<8x128xf32>
    %253 = arith.addf %252, %251 : vector<8x128xf32>
    %254 = arith.mulf %248, %253 : vector<8x128xf32>
    %255 = arith.truncf %254 : vector<8x128xf32> to vector<8x128xbf16>
    %c0_117 = arith.constant 0 : index
    %c0_118 = arith.constant 0 : index
    %c0_119 = arith.constant 0 : index
    %256 = vector.load %arg25[%c0_117, %c0_118, %c0_119] : memref<1x128x32xbf16, #tpu.memory_space<vmem>>, vector<1x128x32xbf16>
    %257 = vector.shape_cast %256 : vector<1x128x32xbf16> to vector<128x32xbf16>
    %cst_120 = arith.constant dense<0.000000e+00> : vector<8x32xf32>
    %258 = tpu.matmul %255, %257, %cst_120 {dimension_numbers = #tpu.dot_dimension_numbers<[1], [0], [0], [1], [0, 0, 1, 1], [], []>} : vector<8x128xbf16>, vector<128x32xbf16>, vector<8x32xf32> -> vector<8x32xf32>
    %c0_121 = arith.constant 0 : index
    %c0_122 = arith.constant 0 : index
    %c0_123 = arith.constant 0 : index
    %259 = vector.load %arg26[%c0_121, %c0_122, %c0_123] : memref<1x1x32xf32, #tpu.memory_space<vmem>>, vector<1x1x32xf32>
    %260 = vector.shape_cast %259 : vector<1x1x32xf32> to vector<1x32xf32>
    %261 = vector.broadcast %260 : vector<1x32xf32> to vector<8x32xf32>
    %262 = arith.addf %258, %261 : vector<8x32xf32>
    %263 = arith.addf %238, %262 : vector<8x32xf32>
    %c0_124 = arith.constant 0 : index
    %c0_125 = arith.constant 0 : index
    %c0_126 = arith.constant 0 : index
    %264 = vector.load %arg27[%c0_124, %c0_125, %c0_126] : memref<1x1x32xf32, #tpu.memory_space<vmem>>, vector<1x1x32xf32>
    %265 = vector.shape_cast %264 : vector<1x1x32xf32> to vector<1x32xf32>
    %266 = arith.mulf %263, %263 : vector<8x32xf32>
    %cst_127 = arith.constant dense<0.000000e+00> : vector<8xf32>
    %267 = vector.multi_reduction <add>, %266, %cst_127 [1] : vector<8x32xf32> to vector<8xf32>
    %268 = vector.shape_cast %267 : vector<8xf32> to vector<8x1xf32>
    %cst_128 = arith.constant 3.200000e+01 : f32
    %269 = vector.broadcast %cst_128 : f32 to vector<8x1xf32>
    %270 = arith.divf %268, %269 : vector<8x1xf32>
    %cst_129 = arith.constant 1.1920929E-7 : f32
    %271 = vector.broadcast %cst_129 : f32 to vector<8x1xf32>
    %272 = arith.addf %270, %271 : vector<8x1xf32>
    %273 = math.rsqrt %272 : vector<8x1xf32>
    %274 = vector.broadcast %273 : vector<8x1xf32> to vector<8x32xf32>
    %275 = arith.mulf %263, %274 : vector<8x32xf32>
    %276 = vector.broadcast %265 : vector<1x32xf32> to vector<8x32xf32>
    %277 = arith.mulf %275, %276 : vector<8x32xf32>
    %c0_130 = arith.constant 0 : index
    %c0_131 = arith.constant 0 : index
    %278 = vector.load %arg29[%c0_130, %c0_131] : memref<8x32xf32, #tpu.memory_space<vmem>>, vector<8x32xf32>
    tpu.vector_store %arg29[%c0_130, %c0_131], %277 {strides = array<i32>} : memref<8x32xf32, #tpu.memory_space<vmem>>, vector<8x32xf32>,
    %c1_i32 = arith.constant 1 : i32
    %279 = arith.cmpi eq, %arg1, %c1_i32 : i32
    %280 = arith.extui %279 : i1 to i32
    %c0_i32_132 = arith.constant 0 : i32
    %281 = arith.cmpi ne, %280, %c0_i32_132 : i32
    scf.if %281 {
      %c0_133 = arith.constant 0 : index
      %c0_134 = arith.constant 0 : index
      %c0_135 = arith.constant 0 : index
      %282 = vector.load %arg28[%c0_133, %c0_134, %c0_135] : memref<1x8x32xf32, #tpu.memory_space<vmem>>, vector<1x8x32xf32>
      %283 = vector.shape_cast %282 : vector<1x8x32xf32> to vector<8x32xf32>
      %284 = vector.shape_cast %277 : vector<8x32xf32> to vector<1x8x32xf32>
      tpu.vector_store %arg28[%c0_133, %c0_134, %c0_135], %284 {strides = array<i32>} : memref<1x8x32xf32, #tpu.memory_space<vmem>>, vector<1x8x32xf32>,
    } else {
    }
    return
  }
  func.func @transform_0(%arg0: i32, %arg1: i32) -> (i32, i32, i32) {
    %c0_i32 = arith.constant 0 : i32
    %c0_i32_0 = arith.constant 0 : i32
    %c0_i32_1 = arith.constant 0 : i32
    return %arg0, %c0_i32, %c0_i32_0 : i32, i32, i32
  }
  func.func @transform_1(%arg0: i32, %arg1: i32) -> (i32, i32, i32) {
    %c0_i32 = arith.constant 0 : i32
    %c0_i32_0 = arith.constant 0 : i32
    %c0_i32_1 = arith.constant 0 : i32
    return %arg0, %c0_i32, %c0_i32_0 : i32, i32, i32
  }
  func.func @transform_2(%arg0: i32, %arg1: i32) -> (i32, i32, i32) {
    %c0_i32 = arith.constant 0 : i32
    %c0_i32_0 = arith.constant 0 : i32
    %c0_i32_1 = arith.constant 0 : i32
    return %arg0, %c0_i32, %c0_i32_0 : i32, i32, i32
  }
  func.func @transform_3(%arg0: i32, %arg1: i32) -> (i32, i32, i32) {
    %c0_i32 = arith.constant 0 : i32
    %c0_i32_0 = arith.constant 0 : i32
    %c0_i32_1 = arith.constant 0 : i32
    return %arg1, %c0_i32, %c0_i32_0 : i32, i32, i32
  }
  func.func @transform_4(%arg0: i32, %arg1: i32) -> (i32, i32, i32) {
    %c0_i32 = arith.constant 0 : i32
    %c0_i32_0 = arith.constant 0 : i32
    %c0_i32_1 = arith.constant 0 : i32
    return %arg1, %c0_i32, %c0_i32_0 : i32, i32, i32
  }
  func.func @transform_5(%arg0: i32, %arg1: i32) -> (i32, i32, i32) {
    %c0_i32 = arith.constant 0 : i32
    %c0_i32_0 = arith.constant 0 : i32
    %c0_i32_1 = arith.constant 0 : i32
    return %arg1, %c0_i32, %c0_i32_0 : i32, i32, i32
  }
  func.func @transform_6(%arg0: i32, %arg1: i32) -> (i32, i32, i32) {
    %c0_i32 = arith.constant 0 : i32
    %c0_i32_0 = arith.constant 0 : i32
    %c0_i32_1 = arith.constant 0 : i32
    return %arg1, %c0_i32, %c0_i32_0 : i32, i32, i32
  }
  func.func @transform_7(%arg0: i32, %arg1: i32) -> (i32, i32, i32) {
    %c0_i32 = arith.constant 0 : i32
    %c0_i32_0 = arith.constant 0 : i32
    %c0_i32_1 = arith.constant 0 : i32
    return %arg1, %c0_i32, %c0_i32_0 : i32, i32, i32
  }
  func.func @transform_8(%arg0: i32, %arg1: i32) -> (i32, i32, i32) {
    %c0_i32 = arith.constant 0 : i32
    %c0_i32_0 = arith.constant 0 : i32
    %c0_i32_1 = arith.constant 0 : i32
    return %arg1, %c0_i32, %c0_i32_0 : i32, i32, i32
  }
  func.func @transform_9(%arg0: i32, %arg1: i32) -> (i32, i32, i32) {
    %c0_i32 = arith.constant 0 : i32
    %c0_i32_0 = arith.constant 0 : i32
    %c0_i32_1 = arith.constant 0 : i32
    return %arg1, %c0_i32, %c0_i32_0 : i32, i32, i32
  }
  func.func @transform_10(%arg0: i32, %arg1: i32) -> (i32, i32, i32) {
    %c0_i32 = arith.constant 0 : i32
    %c0_i32_0 = arith.constant 0 : i32
    %c0_i32_1 = arith.constant 0 : i32
    return %arg1, %c0_i32, %c0_i32_0 : i32, i32, i32
  }
  func.func @transform_11(%arg0: i32, %arg1: i32) -> (i32, i32, i32) {
    %c0_i32 = arith.constant 0 : i32
    %c0_i32_0 = arith.constant 0 : i32
    %c0_i32_1 = arith.constant 0 : i32
    return %arg1, %c0_i32, %c0_i32_0 : i32, i32, i32
  }
  func.func @transform_12(%arg0: i32, %arg1: i32) -> (i32, i32, i32) {
    %c0_i32 = arith.constant 0 : i32
    %c0_i32_0 = arith.constant 0 : i32
    %c0_i32_1 = arith.constant 0 : i32
    return %arg1, %c0_i32, %c0_i32_0 : i32, i32, i32
  }
  func.func @transform_13(%arg0: i32, %arg1: i32) -> (i32, i32, i32) {
    %c0_i32 = arith.constant 0 : i32
    %c0_i32_0 = arith.constant 0 : i32
    %c0_i32_1 = arith.constant 0 : i32
    return %arg1, %c0_i32, %c0_i32_0 : i32, i32, i32
  }
  func.func @transform_14(%arg0: i32, %arg1: i32) -> (i32, i32, i32) {
    %c0_i32 = arith.constant 0 : i32
    %c0_i32_0 = arith.constant 0 : i32
    %c0_i32_1 = arith.constant 0 : i32
    return %arg1, %c0_i32, %c0_i32_0 : i32, i32, i32
  }
  func.func @transform_15(%arg0: i32, %arg1: i32) -> (i32, i32, i32) {
    %c0_i32 = arith.constant 0 : i32
    %c0_i32_0 = arith.constant 0 : i32
    %c0_i32_1 = arith.constant 0 : i32
    return %arg1, %c0_i32, %c0_i32_0 : i32, i32, i32
  }
  func.func @transform_16(%arg0: i32, %arg1: i32) -> (i32, i32, i32) {
    %c0_i32 = arith.constant 0 : i32
    %c0_i32_0 = arith.constant 0 : i32
    %c0_i32_1 = arith.constant 0 : i32
    return %arg1, %c0_i32, %c0_i32_0 : i32, i32, i32
  }
  func.func @transform_17(%arg0: i32, %arg1: i32) -> (i32, i32, i32) {
    %c0_i32 = arith.constant 0 : i32
    %c0_i32_0 = arith.constant 0 : i32
    %c0_i32_1 = arith.constant 0 : i32
    return %arg1, %c0_i32, %c0_i32_0 : i32, i32, i32
  }
  func.func @transform_18(%arg0: i32, %arg1: i32) -> (i32, i32, i32) {
    %c0_i32 = arith.constant 0 : i32
    %c0_i32_0 = arith.constant 0 : i32
    %c0_i32_1 = arith.constant 0 : i32
    return %arg1, %c0_i32, %c0_i32_0 : i32, i32, i32
  }
  func.func @transform_19(%arg0: i32, %arg1: i32) -> (i32, i32, i32) {
    %c0_i32 = arith.constant 0 : i32
    %c0_i32_0 = arith.constant 0 : i32
    %c0_i32_1 = arith.constant 0 : i32
    return %arg1, %c0_i32, %c0_i32_0 : i32, i32, i32
  }
  func.func @transform_20(%arg0: i32, %arg1: i32) -> (i32, i32, i32) {
    %c0_i32 = arith.constant 0 : i32
    %c0_i32_0 = arith.constant 0 : i32
    %c0_i32_1 = arith.constant 0 : i32
    return %arg1, %c0_i32, %c0_i32_0 : i32, i32, i32
  }
  func.func @transform_21(%arg0: i32, %arg1: i32) -> (i32, i32, i32) {
    %c0_i32 = arith.constant 0 : i32
    %c0_i32_0 = arith.constant 0 : i32
    %c0_i32_1 = arith.constant 0 : i32
    return %arg1, %c0_i32, %c0_i32_0 : i32, i32, i32
  }
  func.func @transform_22(%arg0: i32, %arg1: i32) -> (i32, i32, i32) {
    %c0_i32 = arith.constant 0 : i32
    %c0_i32_0 = arith.constant 0 : i32
    %c0_i32_1 = arith.constant 0 : i32
    return %arg1, %c0_i32, %c0_i32_0 : i32, i32, i32
  }
  func.func @transform_23(%arg0: i32, %arg1: i32) -> (i32, i32, i32) {
    %c0_i32 = arith.constant 0 : i32
    %c0_i32_0 = arith.constant 0 : i32
    %c0_i32_1 = arith.constant 0 : i32
    return %arg1, %c0_i32, %c0_i32_0 : i32, i32, i32
  }
  func.func @transform_24(%arg0: i32, %arg1: i32) -> (i32, i32, i32) {
    %c0_i32 = arith.constant 0 : i32
    %c0_i32_0 = arith.constant 0 : i32
    %c0_i32_1 = arith.constant 0 : i32
    return %arg1, %c0_i32, %c0_i32_0 : i32, i32, i32
  }
  func.func @transform_25(%arg0: i32, %arg1: i32) -> (i32, i32, i32) {
    %c0_i32 = arith.constant 0 : i32
    %c0_i32_0 = arith.constant 0 : i32
    %c0_i32_1 = arith.constant 0 : i32
    return %arg1, %c0_i32, %c0_i32_0 : i32, i32, i32
  }
  func.func @transform_26(%arg0: i32, %arg1: i32) -> (i32, i32, i32) {
    %c0_i32 = arith.constant 0 : i32
    %c0_i32_0 = arith.constant 0 : i32
    %c0_i32_1 = arith.constant 0 : i32
    return %arg0, %c0_i32, %c0_i32_0 : i32, i32, i32
  }
}

</mosaic_0001>

<bundles_post_ra>
// kernel: tpu_custom_call.1
= control target key start
LH: loop header
LB: loop body
LE: loop exit
PB: predicated region body
PF: predicated region fallthrough
CT: control target
= control target key end

     0   :  { %s4442_s0 = inlined_call_operand.hbm [shape: f32[2,8,32], index: 0, kind: input, shape index: {}]   ;;  %s4443_s1 = inlined_call_operand.hbm [shape: bf16[2,16,32], index: 1, kind: input, shape index: {}]   ;;  %s4444_s2 = inlined_call_operand.hbm [shape: bf16[2,8,8], index: 2, kind: input, shape index: {}]   ;;  %s4445_s3 = inlined_call_operand.vmem [shape: bf16[2,32,32], index: 3, kind: input, shape index: {}]   ;;  %s4446_s4 = inlined_call_operand.vmem [shape: f32[2,1,32], index: 4, kind: input, shape index: {}]   ;;  %s4447_s5 = inlined_call_operand.vmem [shape: bf16[2,32,32], index: 5, kind: input, shape index: {}]   ;;  %s4448_s6 = inlined_call_operand.vmem [shape: f32[2,1,32], index: 6, kind: input, shape index: {}]   ;;  %s4449_s7 = inlined_call_operand.vmem [shape: bf16[2,32,32], index: 7, kind: input, shape index: {}]   ;;  %s4450_s8 = inlined_call_operand.vmem [shape: f32[2,1,32], index: 8, kind: input, shape index: {}]   ;;  %s4451_s9 = inlined_call_operand.vmem [shape: bf16[2,32,32], index: 9, kind: input, shape index: {}]   ;;  %s4452_s10 = inlined_call_operand.vmem [shape: f32[2,1,32], index: 10, kind: input, shape index: {}]   ;;  %s4453_s11 = inlined_call_operand.hbm [shape: f32[2,1,32], index: 11, kind: input, shape index: {}]   ;;  %s4454_s12 = inlined_call_operand.vmem [shape: bf16[2,32,32], index: 12, kind: input, shape index: {}]   ;;  %s4455_s13 = inlined_call_operand.vmem [shape: f32[2,1,32], index: 13, kind: input, shape index: {}]   ;;  %s4456_s14 = inlined_call_operand.hbm [shape: bf16[2,32,32], index: 14, kind: input, shape index: {}]   ;;  %s4457_s15 = inlined_call_operand.vmem [shape: f32[2,1,32], index: 15, kind: input, shape index: {}]   ;;  %s4458_s16 = inlined_call_operand.hbm [shape: bf16[2,32,32], index: 16, kind: input, shape index: {}]   ;;  %s4459_s17 = inlined_call_operand.vmem [shape: f32[2,1,32], index: 17, kind: input, shape index: {}]   ;;  %s4460_s18 = inlined_call_operand.hbm [shape: bf16[2,32,32], index: 18, kind: input, shape index: {}]   ;;  %s4461_s19 = inlined_call_operand.vmem [shape: f32[2,1,32], index: 19, kind: input, shape index: {}]   ;;  %s4462_s20 = inlined_call_operand.vmem [shape: f32[2,1,32], index: 20, kind: input, shape index: {}]   ;;  %s4463_s21 = inlined_call_operand.hbm [shape: bf16[2,32,128], index: 21, kind: input, shape index: {}]   ;;  %s4464_s22 = inlined_call_operand.vmem [shape: f32[2,1,128], index: 22, kind: input, shape index: {}]   ;;  %s4465_s23 = inlined_call_operand.vmem [shape: bf16[2,128,32], index: 23, kind: input, shape index: {}]   ;;  %s4466_s24 = inlined_call_operand.vmem [shape: f32[2,1,32], index: 24, kind: input, shape index: {}]   ;;  %s4467_s25 = inlined_call_operand.hbm [shape: f32[2,1,32], index: 25, kind: input, shape index: {}]   ;;  %s4468_s26 = inlined_call_operand.hbm [shape: f32[2,8,32], index: 26, kind: output, shape index: {}]  }
   0x1   :  { %4508 = sst [smem:[#allocation45_spill]] %s4442_s0 }
   0x2   :  { %4509 = sst [smem:[#allocation46_spill]] %s4443_s1 }
   0x3   :  { %4510 = sst [smem:[#allocation47_spill]] %s4444_s2 }
   0x4   :  { %4511 = sst [smem:[#allocation48_spill]] %s4445_s3 }
   0x5   :  { %4512 = sst [smem:[#allocation49_spill]] %s4446_s4 }
   0x6   :  { %4513 = sst [smem:[#allocation50_spill]] %s4447_s5 }
   0x7   :  { %4514 = sst [smem:[#allocation51_spill]] %s4448_s6 }
   0x8   :  { %4515 = sst [smem:[#allocation52_spill]] %s4449_s7 }
   0x9   :  { %4516 = sst [smem:[#allocation53_spill]] %s4450_s8 }
   0xa   :  { %4517 = sst [smem:[#allocation54_spill]] %s4451_s9 }
   0xb   :  { %4518 = sst [smem:[#allocation55_spill]] %s4452_s10 }
   0xc   :  { %4519 = sst [smem:[#allocation56_spill]] %s4453_s11 }
   0xd   :  { %4520 = sst [smem:[#allocation57_spill]] %s4454_s12 }
   0xe   :  { %4521 = sst [smem:[#allocation58_spill]] %s4455_s13 }
   0xf   :  { %4522 = sst [smem:[#allocation59_spill]] %s4456_s14 }
  0x10   :  { %4523 = sst [smem:[#allocation60_spill]] %s4457_s15 }
  0x11   :  { %4524 = sst [smem:[#allocation61_spill]] %s4458_s16 }
  0x12   :  { %4525 = sst [smem:[#allocation62_spill]] %s4459_s17 }
  0x13   :  { %4526 = sst [smem:[#allocation63_spill]] %s4460_s18 }
  0x14   :  { %4527 = sst [smem:[#allocation64_spill]] %s4461_s19 }
  0x15   :  { %4528 = sst [smem:[#allocation65_spill]] %s4462_s20 }
  0x16   :  { %4529 = sst [smem:[#allocation66_spill]] %s4463_s21 }
  0x17   :  { %4530 = sst [smem:[#allocation67_spill]] %s4464_s22 }
  0x18   :  { %4531 = sst [smem:[#allocation68_spill]] %s4465_s23 }
  0x19   :  { %4532 = sst [smem:[#allocation69_spill]] %s4466_s24 }
  0x1a   :  { %4533 = sst [smem:[#allocation70_spill]] %s4467_s25 }
  0x1b   :  { %4534 = sst [smem:[#allocation71_spill]] %s4468_s26 }
  0x1c   :  { %31 = vsyncpa [#allocation4], 0 }
  0x1d   :  { %32 = vsyncpa [#allocation7], 0 }
  0x1e   :  { %33 = vsyncpa [#allocation10], 0 }
  0x1f   :  { %35 = vsyncpa [#allocation10 + $0x1], 0 }
  0x20   :  { %36 = vsyncpa [#allocation13], 0 }
  0x21   :  { %38 = vsyncpa [#allocation13 + $0x1], 0 }
  0x22   :  { %39 = vsyncpa [#allocation16], 0 }
  0x23   :  { %41 = vsyncpa [#allocation16 + $0x1], 0 }
  0x24   :  { %42 = vsyncpa [#allocation5], 0 }
  0x25   :  { %44 = vsyncpa [#allocation5 + $0x1], 0  ;;  %s3791_s27 = smov 0   ;;  %s3793_s3 = smov 0  }
  0x26   :  { %s3795_s7 = smov 0   ;;  %s3797_s28 = smov 0  }
  0x27   :  { %s3799_s8 = smov 0   ;;  %s3801_s4 = smov 0  }
  0x28   :  { %s3803_s29 = smov 0   ;;  %s3805_s0 = smov 0  }
  0x29   :  { %s3807_s9 = smov 0   ;;  %s3809_s30 = smov 0  }
  0x2a   :  { %s3811_s2 = smov 0  }
  0x2b LB: > { %4535 = sst [smem:[#allocation25_spill]] %s3605_s3  ;;  %s3847_s5 = sadd.s32 4294967295, %s3641_s2   ;;  %s3641_s2 = sphi %s3811_s2, %s50_s2   ;;  %s3637_s30 = sphi %s3809_s30, %s4651_s30   ;;  %s3633_s9 = sphi %s3807_s9, %s4650_s9   ;;  %s3629_s0 = sphi %s3805_s0, %s4649_s0   ;;  %s3625_s29 = sphi %s3803_s29, %s4648_s29   ;;  %s3621_s4 = sphi %s3801_s4, %s4647_s4   ;;  %s3617_s8 = sphi %s3799_s8, %s4646_s8   ;;  %s3613_s28 = sphi %s3797_s28, %s4645_s28   ;;  %s3609_s7 = sphi %s3795_s7, %s4644_s7   ;;  %s3605_s3 = sphi %s3793_s3, %s4643_s3   ;;  %s3601_s27 = sphi %s3791_s27, %s4642_s27  }
  0x2c   : > { %4536 = sst [smem:[#allocation26_spill]] %s3609_s7  ;;  %s2805_s10 = sadd.s32 4294967294, %s3641_s2  }
  0x2d   : > { %4537 = sst [smem:[#allocation27_spill]] %s3613_s28  ;;  %p82_p0 = scmp.ne.s32.totalorder %s3617_s8, %s3613_s28 }
  0x2e   : > { %4538 = sst [smem:[#allocation28_spill]] %s3617_s8  ;;  %p83_p1 = scmp.eq.s32.totalorder %s3847_s5, 0 }
  0x2f   : > { %4539 = sst [smem:[#allocation29_spill]] %s3621_s4  ;;  %p755_p2 = scmp.ne.s32.totalorder %s3621_s4, %s3617_s8 }
  0x30   : > { %4540 = sst [smem:[#allocation30_spill]] %s3625_s29  ;;  %p756_p3 = scmp.eq.s32.totalorder %s3847_s5, 3 }
  0x31   : > { %4541 = sst [smem:[#allocation31_spill]] %s3633_s9  ;;  %p762_p4 = scmp.eq.s32.totalorder %s2805_s10, 3 }
  0x32   : > { %4542 = sst [smem:[#allocation32_spill]] %s3637_s30  ;;  %p3859_p5 = por %p83_p1, %p82_p0 }
  0x33   : > { %4543 = sst [smem:[#allocation33_spill]] %s3641_s2  ;;  %p2806_p6 = scmp.ge.s32.totalorder %s3641_s2, 1 }
  0x34   : > { %4544 = sst [smem:[#allocation34_spill]] %s3847_s5  ;;  %p3864_p7 = por %p756_p3, %p755_p2 }
  0x35   : > { %s4545_s1 = scalar_select %p3859_p5, 1, 0 }
  0x36   : > { %s4547_s26 = scalar_select %p3864_p7, 1, 0 }
  0x37   : > { %4546 = sst [smem:[#allocation35_spill]] %s4545_s1  ;;  %p3868_p8 = por %p762_p4, %p82_p0 }
  0x38   : > { %4548 = sst [smem:[#allocation36_spill]] %s4547_s26  ;;  %p769_p9 = scmp.lt.s32.totalorder %s3641_s2, 5 }
  0x39   : > { %s4549_s23 = scalar_select %p3868_p8, 1, 0 }
  0x3a   : > { %s3874_s6 = sshll.u32 %s3629_s0, 3  ;;  %s4552_s24 = sld [smem:[#allocation46_spill]] }
  0x3b   : > { %4550 = sst [smem:[#allocation37_spill]] %s4549_s23  ;;  %p3880_p10 = pnand %p2806_p6, %p769_p9 }
  0x3c   : > { %4551 = sst [smem:[#allocation38_spill]] %s3874_s6  ;;  %s3643_s26 = smov [#allocation6]  }
  0x3d   : > { %s799_s17 = sshll.u32 %s3643_s26, 4  ;;  %p3040_p11 = pneg %p3880_p10  ;;  %s800_s17 = int_to_ptr.vmem [resolvable:$true] %s799_s17 }
  0x3f   : > { %p3888_p12 = pnand %p3040_p11, %p3859_p5 }
  0x40   : > { %s796_s22 = scalar_lea.hbm %s4552_s24, %s3874_s6  ;;  %s3240_s15 = scalar_lea.hbm %s4552_s24, 16 }
  0x41   : > { %s797_s19 = sshll.u32 %s796_s22, 4  ;;  %p4478_p0 = pneg %p3888_p12  ;;  %s798_s19 = int_to_ptr.hbm [resolvable:$true] %s797_s19 }
  0x42   : > { %s3233_s28 = sshra.s32 %s798_s19, 4  ;;  %s3234_s28 = int_to_ptr.hbm [resolvable:$true] %s3233_s28 }
  0x43   : > { %s3235_s10 = scalar_lea.hbm %s3234_s28, 8  ;;  %p3241_p4 = scmp.lt.s32.totalorder %s3234_s28, %s4552_s24 }
  0x44   : > { %p3236_p13 = scmp.ne.s32.totalorder %s3234_s28, %s3235_s10  ;;  %p3242_p6 = scmp.lt.s32.totalorder %s3240_s15, %s3235_s10 }
  0x46   : > { %p3238_p2 = pnand %p4478_p0, %p3236_p13  ;;  %p3243_p9 = por %p3242_p6, %p3241_p4 }
  0x48   : > { %p3239_p3 = pneg %p3238_p2 }
  0x4a   : > { %p3244_p11 = pnand %p3243_p9, %p3239_p3 }
  0x4c   : > { %3247 = shalt.err (!%p3244_p11)
}
  0x4d   : > { %s4479_s29 = smov 64   ;;  %s4481_s22 = smov 4  }
  0x4e   : > { %3046 = dma.hbm_to_vmem [thread:$0]  (!%p3888_p12), %s798_s19, 128, %s800_s17, [#allocation7], %s4479_s29, %s4479_s29, %s4481_s22  }
  0x4f   : > { %s59_s12 = sadd.s32 1, %s3633_s9  ;;  %s62_s13 = sadd.s32 1, %s3637_s30 }
  0x50   : > { %p60_p13 = scmp.ge.s32.totalorder %s59_s12, 2  ;;  %s355_s15 = sadd.s32 1, %s3609_s7 }
  0x51   : > { %p362_p2 = scmp.ne.s32.totalorder %s3609_s7, %s3605_s3  ;;  %p363_p3 = scmp.eq.s32.totalorder %s3641_s2, 0 }
  0x52   : > { %s4653_s12 = smov (%p60_p13, %s59_s12), 0  ;;  %s4655_s13 = smov (!%p60_p13, %s62_s13), %s3637_s30 }
  0x53   : > { %4555 = sst [smem:[#allocation39_spill]] %s4653_s12  ;;  %s352_s28 = ssub.s32 %s3633_s9, %s4653_s12 }
  0x54   : > { %p64_p4 = scmp.ge.s32.totalorder %s4655_s13, 2  ;;  %p353_p6 = scmp.eq.s32.totalorder %s352_s28, 0 }
  0x55   : > { %p3919_p9 = por %p363_p3, %p362_p2  ;;  %p368_p11 = scmp.ne.s32.totalorder %s3605_s3, %s3601_s27 }
  0x56   : > { %s4657_s13 = smov (%p64_p4, %s4655_s13), 0  ;;  %p3073_p8 = scmp.lt.s32.totalorder %s3641_s2, 4 }
  0x57   : > { %4557 = sst [smem:[#allocation40_spill]] %s4657_s13  ;;  %s66_s10 = ssub.s32 %s3637_s30, %s4657_s13 }
  0x58   : > { %s3928_s19 = scalar_select %p353_p6, %s3609_s7, %s355_s15  }
  0x59   : > { %p3934_p0 = por %p368_p11, %p83_p1  ;;  %p67_p13 = scmp.eq.s32.totalorder %s66_s10, 0 }
  0x5a   : > { %4558 = sst [smem:[#allocation41_spill]] %s3928_s19  ;;  %s3940_s28 = sand.u32 1, %s3641_s2  }
  0x5b   : > { %s4559_s26 = scalar_select %p3934_p0, 1, 0 }
  0x5c   : > { %s3943_s27 = sand.u32 1, %s3609_s7   ;;  %s4561_s29 = sadd.s32 1, %s3621_s4 }
  0x5d   : > { %4560 = sst [smem:[#allocation42_spill]] %s4559_s26  ;;  %s886_s12 = scalar_lea.vmem [#allocation9], %s3943_s27 }
  0x5e   : > { %s3948_s15 = scalar_select %p67_p13, %s3621_s4, %s4561_s29  }
  0x5f   : > { %s4563_s11 = sld [smem:[#allocation56_spill]]  ;;  %s893_s30 = sshll.u32 %s886_s12, 4  ;;  %s894_s30 = int_to_ptr.vmem [resolvable:$true] %s893_s30 }
  0x60   : > { %4562 = sst [smem:[#allocation43_spill]] %s3948_s15  ;;  %p3957_p1 = pnand %p3073_p8, %p3919_p9 }
  0x61   : > { %s3962_s29 = sshll.u32 %s3943_s27, 4  ;;  %s4489_s24 = scalar_lea.sflag [#allocation10], %s3940_s28 }
  0x62   : > { %s3970_s22 = sshll.u32 %s3633_s9, 4  ;;  %s4565_s16 = sld [smem:[#allocation61_spill]] }
  0x63   : > { %s4496_s7 = scalar_lea.sflag [#allocation13], %s3940_s28  ;;  %s4568_s21 = sld [smem:[#allocation66_spill]] }
  0x64   : > { %s1008_s2 = scalar_lea.vmem [#allocation15], %s3962_s29  ;;  %p4571_p2 = pneg %p3888_p12 }
  0x65   : > { %s889_s13 = scalar_lea.hbm %s4563_s11, %s3633_s9  ;;  %s946_s11 = scalar_lea.vmem [#allocation12], %s3962_s29 }
  0x66   : > { %s891_s10 = sshll.u32 %s889_s13, 4  ;;  %s954_s15 = sshll.u32 %s946_s11, 4  ;;  %s892_s10 = int_to_ptr.hbm [resolvable:$true] %s891_s10  ;;  %s955_s15 = int_to_ptr.vmem [resolvable:$true] %s954_s15 }
  0x67   : > { %3053 = dma.hbm_to_vmem [thread:$0]  (!%p3957_p1), %s892_s10, 16, %s894_s30, %s4489_s24  }
  0x68   : > { %s951_s17 = scalar_lea.hbm %s4565_s16, %s3970_s22  ;;  %s4566_s30 = smov 4  }
  0x69   : > { %s952_s4 = sshll.u32 %s951_s17, 4  ;;  %s4567_s10 = smov 64   ;;  %s953_s4 = int_to_ptr.hbm [resolvable:$true] %s952_s4 }
  0x6a   : > { %3059 = dma.hbm_to_vmem [thread:$0]  (!%p3957_p1), %s953_s4, 256, %s955_s15, %s4496_s7, %s4567_s10, %s4567_s10, %s4566_s30  }
  0x6b   : > { %s1013_s13 = scalar_lea.hbm %s4568_s21, %s3970_s22  ;;  %s1016_s16 = sshll.u32 %s1008_s2, 4  ;;  %s1017_s16 = int_to_ptr.vmem [resolvable:$true] %s1016_s16 }
  0x6c   : > { %s1014_s8 = sshll.u32 %s1013_s13, 4  ;;  %s4499_s11 = scalar_lea.sflag [#allocation16], %s3940_s28  ;;  %s1015_s8 = int_to_ptr.hbm [resolvable:$true] %s1014_s8 }
  0x6d   : > { %3065 = dma.hbm_to_vmem [thread:$0]  (!%p3957_p1), %s1015_s8, 256, %s1017_s16, %s4499_s11, %s4567_s10, %s4567_s10, %s4566_s30  }
  0x6e   : > { %s4569_s4 = sld [smem:[#allocation45_spill]]  ;;  %s3646_s24 = smov [#allocation3]  }
  0x6f   : > { %s785_s12 = sshll.u32 %s3646_s24, 4  ;;  %s2810_s2 = sshll.u32 %s3629_s0, 2  ;;  %s786_s12 = int_to_ptr.vmem [resolvable:$true] %s785_s12 }
  0x74   : > { %s4570_s15 = smov %s4569_s4  ;;  %s781_s7 = scalar_lea.hbm %s4569_s4, %s3874_s6 }
  0x75   : > { %s783_s3 = sshll.u32 %s781_s7, 4  ;;  %s3360_s8 = scalar_lea.hbm %s4570_s15, 16  ;;  %s784_s3 = int_to_ptr.hbm [resolvable:$true] %s783_s3 }
  0x76   : > { %s3353_s13 = sshra.s32 %s784_s3, 4  ;;  %s3354_s13 = int_to_ptr.hbm [resolvable:$true] %s3353_s13 }
  0x77   : > { %s3355_s21 = scalar_lea.hbm %s3354_s13, 8  ;;  %p3361_p6 = scmp.lt.s32.totalorder %s3354_s13, %s4570_s15 }
  0x78   : > { %p3356_p8 = scmp.ne.s32.totalorder %s3354_s13, %s3355_s21  ;;  %p3362_p9 = scmp.lt.s32.totalorder %s3360_s8, %s3355_s21 }
  0x7a   : > { %p3358_p3 = pnand %p3356_p8, %p4571_p2  ;;  %p3363_p11 = por %p3362_p9, %p3361_p6 }
  0x7c   : > { %p3359_p4 = pneg %p3358_p3 }
  0x7e   : > { %p3364_p13 = pnand %p3363_p11, %p3359_p4 }
  0x80   : > { %3367 = shalt.err (!%p3364_p13)
}
  0x81   : > { %3043 = dma.hbm_to_vmem [thread:$0]  (!%p3888_p12), %s784_s3, 128, %s786_s12, [#allocation4]  }
  0x82   : > { %s4572_s4 = sld [smem:[#allocation47_spill]]  ;;  %s3647_s1 = smov [#allocation8]  }
  0x83   : > { %s816_s5 = sshll.u32 %s3647_s1, 4  ;;  %s817_s5 = int_to_ptr.vmem [resolvable:$true] %s816_s5 }
  0x88   : > { %s4573_s24 = smov %s4572_s4  ;;  %s812_s11 = scalar_lea.hbm %s4572_s4, %s2810_s2 }
  0x89   : > { %s814_s6 = sshll.u32 %s812_s11, 4  ;;  %s3390_s3 = scalar_lea.hbm %s4573_s24, 8  ;;  %s815_s6 = int_to_ptr.hbm [resolvable:$true] %s814_s6 }
  0x8a   : > { %s3383_s16 = sshra.s32 %s815_s6, 4  ;;  %s3384_s16 = int_to_ptr.hbm [resolvable:$true] %s3383_s16 }
  0x8b   : > { %s3385_s13 = scalar_lea.hbm %s3384_s16, 4  ;;  %p3391_p6 = scmp.lt.s32.totalorder %s3384_s16, %s4573_s24 }
  0x8c   : > { %p3386_p8 = scmp.ne.s32.totalorder %s3384_s16, %s3385_s13  ;;  %p3392_p9 = scmp.lt.s32.totalorder %s3390_s3, %s3385_s13 }
  0x8e   : > { %p3388_p3 = pnand %p3386_p8, %p4571_p2  ;;  %p3393_p11 = por %p3392_p9, %p3391_p6 }
  0x90   : > { %p3389_p4 = pneg %p3388_p3 }
  0x92   : > { %p3394_p13 = pnand %p3393_p11, %p3389_p4 }
  0x94   : > { %3397 = shalt.err (!%p3394_p13)
}
  0x95   : > { %3049 = dma.hbm_to_vmem [thread:$0]  (!%p3888_p12), %s815_s6, 64, %s817_s5, [#allocation7]  }
  0x96   : > { %s4574_s14 = sld [smem:[#allocation59_spill]]  ;;  %s918_s7 = scalar_lea.vmem [#allocation11], %s3962_s29 }
  0x97   : > { %s926_s0 = sshll.u32 %s918_s7, 4  ;;  %s4575_s23 = scalar_lea.sflag [#allocation10], %s3940_s28  ;;  %s927_s0 = int_to_ptr.vmem [resolvable:$true] %s926_s0 }
  0x98   : > { %s4576_s18 = sld [smem:[#allocation63_spill]]  ;;  %s974_s13 = scalar_lea.vmem [#allocation14], %s3962_s29 }
  0x99   : > { %s982_s21 = sshll.u32 %s974_s13, 4  ;;  %s4577_s8 = scalar_lea.sflag [#allocation13], %s3940_s28  ;;  %s983_s21 = int_to_ptr.vmem [resolvable:$true] %s982_s21 }
  0x9a   : > { %s4578_s25 = sld [smem:[#allocation70_spill]]  ;;  %s1049_s11 = scalar_lea.vmem [#allocation17], %s3943_s27 }
  0x9b   : > { %s4579_s29 = scalar_lea.sflag [#allocation16], %s3940_s28 }
  0x9c   : > { %s923_s2 = scalar_lea.hbm %s4574_s14, %s3970_s22 }
  0x9d   : > { %s924_s17 = sshll.u32 %s923_s2, 4  ;;  %s1056_s2 = sshll.u32 %s1049_s11, 4  ;;  %s925_s17 = int_to_ptr.hbm [resolvable:$true] %s924_s17  ;;  %s1057_s2 = int_to_ptr.vmem [resolvable:$true] %s1056_s2 }
  0x9e   : > { %3056 = dma.hbm_to_vmem [thread:$0]  (!%p3957_p1), %s925_s17, 256, %s927_s0, %s4575_s23, %s4567_s10, %s4567_s10, %s4566_s30  }
  0x9f   : > { %s979_s5 = scalar_lea.hbm %s4576_s18, %s3970_s22  ;;  %1065 = sbr.rel (%p3880_p10) target bundleno = 3092 (0xc14), region = 124 }
  0xa0   : > { %s980_s16 = sshll.u32 %s979_s5, 4  ;;  %s1052_s26 = scalar_lea.hbm %s4578_s25, %s3633_s9  ;;  %s981_s16 = int_to_ptr.hbm [resolvable:$true] %s980_s16 }
  0xa1   : > { %3062 = dma.hbm_to_vmem [thread:$0]  (!%p3957_p1), %s981_s16, 256, %s983_s21, %s4577_s8, %s4567_s10, %s4567_s10, %s4566_s30  }
  0xa2   : > { %s1054_s1 = sshll.u32 %s1052_s26, 4  ;;  %s1055_s1 = int_to_ptr.hbm [resolvable:$true] %s1054_s1 }
  0xa3   : > { %3068 = dma.hbm_to_vmem [thread:$0]  (!%p3957_p1), %s1055_s1, 16, %s1057_s2, %s4579_s29  }
  0xa4   : > { %3576 = dma.done.wait (%p3859_p5), [#allocation4], 128  }
  0xa5   : > { %3578 = vsyncadd (%p3859_p5), [#allocation4], 4294967168 }
  0xa6   : > { %3580 = dma.done.wait (%p3859_p5), [#allocation7], 192  }
  0xa7   : > { %3582 = vsyncadd (%p3859_p5), [#allocation7], 4294967104  ;;  %s4581_s27 = sld [smem:[#allocation34_spill]] }
  0xa8   : > { %s4582_s30 = sld [smem:[#allocation25_spill]] }
  0xad   : > { %s1082_s28 = sand.u32 1, %s4581_s27  }
  0xae   : > { %s4073_s10 = sand.u32 1, %s4582_s30   ;;  %s1083_s20 = scalar_lea.sflag [#allocation10], %s1082_s28 }
  0xaf   : > { %3584 = dma.done.wait (%p3934_p0), %s1083_s20, 272  }
  0xb0   : > { %3586 = vsyncadd (%p3934_p0), %s1083_s20, 4294967024  ;;  %s4081_s7 = sshll.u32 %s4073_s10, 4  ;;  %s1102_s23 = scalar_lea.sflag [#allocation13], %s1082_s28 }
  0xb1   : > { %3588 = dma.done.wait (%p3934_p0), %s1102_s23, 512  }
  0xb2   : > { %3590 = vsyncadd (%p3934_p0), %s1102_s23, 4294966784  ;;  %s1122_s5 = scalar_lea.sflag [#allocation16], %s1082_s28 }
  0xb3   : > { %3592 = dma.done.wait (%p3934_p0), %s1122_s5, 272  }
  0xb4   : > { %3594 = vsyncadd (%p3934_p0), %s1122_s5, 4294967024  ;;  %s4584_s13 = sld [smem:[#allocation28_spill]]  ;;  %s1134_s9 = scalar_lea.vmem [#allocation17], %s4073_s10 }
  0xb5   : > { %s4585_s21 = sld [smem:[#allocation30_spill]] }
  0xb6   : > { %s4587_s30 = sld [smem:[#allocation48_spill]] }
  0xb7   : > { %s4588_s23 = sld [smem:[#allocation50_spill]] }
  0xb8   : > { %s4590_s1 = sld [smem:[#allocation52_spill]] }
  0xb9   : > { %s4592_s14 = sld [smem:[#allocation54_spill]] }
  0xba   : > { %s4503_s8 = sand.u32 1, %s4584_s13   ;;  %s4594_s15 = sld [smem:[#allocation57_spill]] }
  0xbb   : > { %s4098_s3 = sshll.u32 %s4503_s8, 3  ;;  %p1290_p5 = scmp.lt.s32.totalorder %s4585_s21, 1 }
  0xbc   : > { %s4598_s29 = sld [smem:[#allocation62_spill]]  ;;  %s1289_s20 = scalar_lea.vmem [#allocation18], %s4098_s3 }
  0xbd   : > { %s4102_s12 = scalar_select %p1290_p5, %s4585_s21, 1 }
  0xbe   : > { %s4601_s4 = sld [smem:[#allocation67_spill]]  ;;  %p2842_p10 = scmp.ne.s32.totalorder %s4585_s21, 0 }
  0xbf   : > { %s2987_s26 = sshll.u32 %s4102_s12, 4  ;;  %s4602_s22 = sld [smem:[#allocation69_spill]] }
  0xc0   : > { %s4112_s19 = scalar_lea.vmem %s4587_s30, %s2987_s26  ;;  %s1302_s5 = scalar_lea.vmem %s4588_s23, %s2987_s26 }
  0xc1   : > { %s4124_s11 = scalar_lea.vmem %s4590_s1, %s2987_s26  ;;  %s4133_s28 = scalar_lea.vmem %s4592_s14, %s2987_s26 }
  0xc2   : > { %s4142_s17 = scalar_lea.vmem %s4594_s15, %s2987_s26  ;;  %s1335_s25 = scalar_lea.vmem %s4598_s29, %s4102_s12 }
  0xc3   : > { %4595 = sst [smem:[#allocation44_spill]] %s4142_s17  ;;  %s2992_s1 = sshll.u32 %s4102_s12, 6 }
  0xc4   : > { %s4599_s23 = sld [smem:[#allocation64_spill]]  ;;  %s1344_s18 = scalar_lea.vmem %s4601_s4, %s4102_s12 }
  0xc5   : > { %s4600_s15 = sld [smem:[#allocation65_spill]]  ;;  %s1352_s27 = scalar_lea.vmem %s4602_s22, %s4102_s12 }
  0xc6   : > { %s4603_s14 = sld [smem:[#allocation68_spill]] }
  0xc8   : > { %1357 = sbr.rel (%p2842_p10) target bundleno = 207 (0xcf), region = 164 }
  0xca   : > { %s1338_s8 = scalar_lea.vmem %s4599_s23, %s4102_s12 }
  0xcb   : > { %s1341_s26 = scalar_lea.vmem %s4600_s15, %s4102_s12 }
  0xcc   : > { %s4176_s29 = scalar_lea.vmem %s4603_s14, %s2992_s1 }
  0xcd   : > { %v1358_v0 = vld [vmem:[#allocation3] sm:$0xff]  ;;  %vm1359_vm0 = vcmask 261120  }
  0xce   : > { %1360 = vst.msk [vmem:[#allocation2] sm:$0xff] %vm1359_vm0, %v1358_v0 }
  0xcf PF: > { %v2997_v1 = vld [vmem:[%s1302_s5 + $0x8] sm:$0xff]  ;;  %v2996_v3 = vld [vmem:[%s1302_s5] sm:$0xff]  ;;  %vm1387_vm1 = vcmask 261120   ;;  %s4604_s30 = sld [smem:[#allocation49_spill]]  ;;  %vm1473_vm2 = vcmask 64512   ;;  %s3648_s6 = smov 112  }
  0xd0   : > { %v2995_v2 = vld [vmem:[%s4112_s19 + $0x8] sm:$0xff]  ;;  %1430 = vmatpush.bf16.msra.mxu2 %v2997_v1  ;;  %v2994_v5 = vld [vmem:[%s4112_s19] sm:$0xff]  ;;  %s4606_s17 = sld [smem:[#allocation51_spill]]  ;;  %s3649_s15 = smov 120   ;;  %v1364_v31 = vld [vmem:[#allocation8] sm:$0xf] }
  0xd1   : > { %1397 = vmatpush.bf16.msra.mxu0 %v2995_v2  ;;  %s3650_s16 = smov 104   ;;  %v2999_v22 = vld [vmem:[%s4124_s11 + $0x8] sm:$0xff]  ;;  %v1365_v32 = vunpack.c.l.bf16 %v1364_v31  ;;  %v2998_v38 = vld [vmem:[%s4124_s11] sm:$0xff]  ;;  %s4608_s1 = sld [smem:[#allocation53_spill]]  ;;  %vm1508_vm3 = vcmask 1043456   ;;  %vm1715_vm4 = vcmask 130048  }
  0xd2   : > { %s3651_s22 = smov 8   ;;  %s3652_s0 = smov 24   ;;  %vm1717_vm5 = vcmask 195584  }
  0xd3   : > { %s3653_s14 = smov 16   ;;  %s4610_s24 = scalar_lea.vmem [#allocation11], %s4081_s7 }
  0xd4   : > { %1431 = vmatpush.bf16.msra.mxu2 %v2996_v3  ;;  %s4612_s21 = sld [smem:[#allocation44_spill]] }
  0xd5   : > { %v4182_v4 = vld [vmem:[#allocation2] sm:$0xff]  ;;  %1398 = vmatpush.bf16.msra.mxu0 %v2994_v5  ;;  %s4605_s13 = scalar_lea.vmem %s4604_s30, %s4102_s12  ;;  %s4613_s5 = sld [smem:[#allocation55_spill]] }
  0xd6   : > { %v1366_v6 = vpack.c.bf16 %v4182_v4, %v4182_v4  ;;  %v3176_v7 = vld [vmem:[%s4605_s13] ss:$0 sm:$0xff]  ;;  %s4607_s23 = scalar_lea.vmem %s4606_s17, %s4102_s12  ;;  %s4615_s11 = sld [smem:[#allocation60_spill]] }
  0xd7   : > { %v3177_v11 = vld [vmem:[%s4607_s23] ss:$0 sm:$0xff]  ;;  %s4609_s2 = scalar_lea.vmem %s4608_s1, %s4102_s12  ;;  %s4617_s1 = scalar_lea.vmem [#allocation9], %s4073_s10 }
  0xd8   : > { %2860 = vmatmul.msk.bf16.vlgmr.msra.gmra.mxu2 %vm1387_vm1, %v1366_v6  ;;  %2851 = vmatmul.msk.bf16.vlgmr.msra.gmra.mxu0 %vm1387_vm1, %v1366_v6  ;;  %v3178_v56 = vld [vmem:[%s4609_s2] ss:$0 sm:$0xff]  ;;  %s4620_s30 = scalar_lea.vmem [#allocation12], %s4081_s7 }
  0xd9   : > { %1463 = vmatpush.bf16.msrb.mxu2 %v2999_v22  ;;  %s4621_s13 = smov %s4620_s30 }
  0xdb   : > { %s4614_s19 = scalar_lea.vmem %s4613_s5, %s4102_s12 }
  0xdc   : > { %s4616_s4 = scalar_lea.vmem %s4615_s11, %s4102_s12 }
  0xdd   : > { %1464 = vmatpush.bf16.msrb.mxu2 %v2998_v38 }
  0xe8   : > { %2869 = vmatmul.msk.bf16.vlgmr.msrb.gmra.mxu2 %vm1387_vm1, %v1366_v6 }
 0x155   : > { %v1400_v8 = vpop.f32.mrf.mxu0 }
 0x156   : > { %v1401_v9 = vadd.f32 %v3176_v7, %v1400_v8 }
 0x158   : > { %v1470_v10 = vpack.c.bf16 %v1401_v9, %v1401_v9 }
 0x15a   : > { %v1526_v12 = vunpack.c.l.b16 %v1470_v10 }
 0x15b   : > { %v1433_v13 = vpop.f32.mrf.mxu2 }
 0x15c   : > { %v1527_v14 = vpack.c.b16 %v1526_v12, %v1526_v12  ;;  %v1434_v15 = vadd.f32 %v3177_v11, %v1433_v13 }
 0x15d   : > { %v1402_v16 = vpop.f32.mrf.mxu0 }
 0x15e   : > { %v1471_v17 = vpack.c.bf16 %v1434_v15, %v1434_v15  ;;  %1590 = vrot.lane.b32.xlu2 %v1527_v14, %s3648_s6 }
 0x160   : > { %v1531_v18 = vunpack.c.l.b16 %v1471_v17  ;;  %v1478_v19 = vsel %vm1473_vm2, %v1471_v17, 0 }
 0x161   : > { %1487 = vmatpush.bf16.xpose.msra.mxu3 %v1478_v19 }
 0x162   : > { %v1532_v20 = vpack.c.b16 %v1531_v18, %v1531_v18 }
 0x163   : > { %v1435_v21 = vpop.f32.mrf.mxu2 }
 0x164   : > { %1592 = vrot.lane.b32.xlu1 %v1532_v20, %s3648_s6  ;;  %1533 = vrot.lane.b32.xlu0 %v1532_v20, %s3649_s15 }
 0x166   : > { %1646 = vrot.lane.b32.xlu2 %v1527_v14, %s3650_s16 }
 0x168   : > { %2870 = vmatmul.msk.bf16.vlgmr.msra.gmra.mxu3 %vm1473_vm2, %v1470_v10 }
 0x16b   : > { %v1466_v57 = vpop.f32.mrf.mxu2 }
 0x16c   : > { %1648 = vrot.lane.b32.xlu1 %v1532_v20, %s3650_s16  ;;  %1528 = vrot.lane.b32.xlu0 %v1527_v14, %s3649_s15  ;;  %v1467_v58 = vadd.f32 %v3178_v56, %v1466_v57  ;;  %v4253_v57 = vld [vmem:[#allocation6] sm:$0xff] }
 0x16e   : > { %v1472_v59 = vpack.c.bf16 %v1467_v58, %v1467_v58  ;;  %v3179_v58 = vld [vmem:[%s4614_s19] ss:$0 sm:$0xff] }
 0x170   : > { %v1567_v60 = vunpack.c.l.b16 %v1472_v59  ;;  %v1510_v61 = vsel %vm1508_vm3, %v1472_v59, 0 }
 0x171   : > { %1519 = vmatpush.bf16.msrb.mxu0 %v1510_v61 }
 0x172   : > { %v1568_v62 = vpack.c.b16 %v1567_v60, %v1567_v60 }
 0x173   : > { %v1468_v63 = vpop.f32.mrf.mxu2 }
 0x1b8   : > { %v1591_v27 = vpop.permute.xlu2 %1590 }
 0x1c0   : > { %v1647_v35 = vpop.permute.xlu2 %1646 }
 0x1d6   : > { %v1593_v23 = vpop.permute.xlu1 %1592  ;;  %v1534_v24 = vpop.permute.xlu0 %1533 }
 0x1d7   : > { %v1539_v25 = vsel %vm1473_vm2, %v1534_v24, 0  ;;  %v1598_v26 = vsel %vm1473_vm2, %v1593_v23, 0 }
 0x1d8   : > { %1548 = vmatpush.bf16.xpose.msra.mxu1 %v1539_v25  ;;  %1607 = vmatpush.bf16.xpose.msrb.mxu3 %v1598_v26 }
 0x1de   : > { %v1649_v28 = vpop.permute.xlu1 %1648  ;;  %v1529_v29 = vpop.permute.xlu0 %1528 }
 0x1df   : > { %2872 = vmatmul.msk.bf16.vlgmr.msra.gmra.mxu1 %vm1473_vm2, %v1529_v29  ;;  %2874 = vmatmul.msk.bf16.vlgmr.msrb.gmra.mxu3 %vm1473_vm2, %v1591_v27  ;;  %v1654_v30 = vsel %vm1473_vm2, %v1649_v28, 0 }
 0x1e0   : > { %1663 = vmatpush.bf16.xpose.msrb.mxu1 %v1654_v30 }
 0x1eb   : > { %v1489_v33 = vpop.f32.mrf.mxu3 }
 0x1ec   : > { %v1490_v34 = vadd.f32 %v1489_v33, %v1365_v32 }
 0x1ee   : > { %v1493_v36 = vsel %vm1473_vm2, %v1490_v34, -inf }
 0x1ef   : > { %2876 = vmatmul.msk.bf16.vlgmr.msrb.gmra.mxu1 %vm1473_vm2, %v1647_v35  ;;  %1494 = vmax.xlane.f32.xlu1 %v1493_v36 }
 0x1f3   : > { %v1491_v37 = vpop.f32.mrf.mxu3 }
 0x25c   : > { %v1550_v39 = vpop.f32.mrf.mxu1 }
 0x25d   : > { %v1551_v40 = vadd.f32 %v1550_v39, %v1365_v32 }
 0x25f   : > { %v1554_v41 = vsel %vm1473_vm2, %v1551_v40, -inf }
 0x260   : > { %1555 = vmax.xlane.f32.xlu0 %v1554_v41 }
 0x262   : > { %v1609_v42 = vpop.f32.mrf.mxu3  ;;  %v1495_v43 = vpop.xlane.xlu1 %1494 }
 0x263   : > { %v1496_v44 = vsub.f32 %v1490_v34, %v1495_v43  ;;  %v1610_v53 = vadd.f32 %v1609_v42, %v1365_v32 }
 0x264   : > { %v1552_v45 = vpop.f32.mrf.mxu1 }
 0x265   : > { %v1497_v46 = vmul.f32 1.442695, %v1496_v44  ;;  %v1613_v55 = vsel %vm1473_vm2, %v1610_v53, -inf }
 0x267   : > { %3189 = vpow2.f32 %v1497_v46  ;;  %v3001_v46 = vld [vmem:[%s4133_s28 + $0x8] sm:$0xff] }
 0x268   : > { %1749 = vmatpush.bf16.msra.mxu3 %v3001_v46 }
 0x26a   : > { %v1611_v47 = vpop.f32.mrf.mxu3 }
 0x26b   : > { %v3000_v47 = vld [vmem:[%s4133_s28] sm:$0xff]  ;;  %s4611_s28 = smov %s4610_s24 }
 0x26c   : > { %v1665_v48 = vpop.f32.mrf.mxu1  ;;  %1750 = vmatpush.bf16.msra.mxu3 %v3000_v47  ;;  %v3004_v56 = vld [vmem:[%s4611_s28] sm:$0xff]  ;;  %s4618_s28 = sld [smem:[#allocation58_spill]] }
 0x26d   : > { %v3190_v49 = vpop.eup %3189  ;;  %v1666_v50 = vadd.f32 %v1665_v48, %v1365_v32 }
 0x26e   : > { %v1499_v51 = vsel %vm1473_vm2, %v3190_v49, 0.0 }
 0x26f   : > { %1500 = vadd.xlane.f32.xlu1 %v1499_v51  ;;  %v1669_v52 = vsel %vm1473_vm2, %v1666_v50, -inf }
 0x270   : > { %1670 = vmax.xlane.f32.xlu2 %v1669_v52 }
 0x274   : > { %v1667_v54 = vpop.f32.mrf.mxu1 }
 0x278   : > { %1614 = vmax.xlane.f32.xlu2 %v1613_v55  ;;  %v3005_v55 = vld [vmem:[%s4610_s24 + $0x8] sm:$0xff] }
 0x279   : > { %1857 = vmatpush.bf16.msra.mxu1 %v3005_v55 }
 0x27d   : > { %1858 = vmatpush.bf16.msra.mxu1 %v3004_v56 }
 0x280   : > { %2908 = vmatmul.msk.bf16.vlgmr.msra.gmra.mxu1 %vm1387_vm1, %v4253_v57 }
 0x290   : > { %1569 = vrot.lane.b32.xlu2 %v1568_v62, %s3649_s15 }
 0x2d3   : > { %v1556_v0 = vpop.xlane.xlu0 %1555 }
 0x2d4   : > { %v1557_v1 = vsub.f32 %v1551_v40, %v1556_v0 }
 0x2d6   : > { %v1558_v2 = vmul.f32 1.442695, %v1557_v1  ;;  %v3654_v1 = vmov 32.0  }
 0x2d8   : > { %3191 = vpow2.f32 %v1558_v2 }
 0x2de   : > { %v3192_v3 = vpop.eup %3191 }
 0x2df   : > { %v1560_v5 = vsel %vm1473_vm2, %v3192_v3, 0.0 }
 0x2e0   : > { %1561 = vadd.xlane.f32.xlu0 %v1560_v5 }
 0x2e2   : > { %v1501_v6 = vpop.xlane.xlu1 %1500 }
 0x2e3   : > { %3193 = vrcp.f32 %v1501_v6  ;;  %v1671_v7 = vpop.xlane.xlu2 %1670  ;;  %v3003_v6 = vld [vmem:[%s4612_s21 + $0x8] sm:$0xff] }
 0x2e4   : > { %v1672_v8 = vsub.f32 %v1666_v50, %v1671_v7 }
 0x2e6   : > { %v1673_v9 = vmul.f32 1.442695, %v1672_v8  ;;  %v3002_v8 = vld [vmem:[%s4612_s21] sm:$0xff]  ;;  %s4619_s21 = scalar_lea.vmem %s4618_s28, %s4102_s12  ;;  %s4631_s12 = sld [smem:[#allocation30_spill]] }
 0x2e8   : > { %3195 = vpow2.f32 %v1673_v9 }
 0x2e9   : > { %v3194_v10 = vpop.eup %3193 }
 0x2ea   : > { %v1503_v11 = vmul.f32 %v3194_v10, %v3190_v49 }
 0x2eb   : > { %v1615_v12 = vpop.xlane.xlu2 %1614 }
 0x2ec   : > { %v1616_v13 = vsub.f32 %v1610_v53, %v1615_v12  ;;  %v1504_v14 = vpack.c.bf16 %v1503_v11, %v1503_v11  ;;  %p2977_p12 = scmp.ne.s32.totalorder %s4631_s12, 1 }
 0x2ee   : > { %v3196_v15 = vpop.eup %3195  ;;  %v1617_v16 = vmul.f32 1.442695, %v1616_v13  ;;  %2871 = vmatmul.msk.bf16.vlgmr.msrb.gmra.mxu0 %vm1473_vm2, %v1504_v14 }
 0x2ef   : > { %v1675_v17 = vsel %vm1473_vm2, %v3196_v15, 0.0 }
 0x2f0   : > { %3197 = vpow2.f32 %v1617_v16  ;;  %1676 = vadd.xlane.f32.xlu0 %v1675_v17 }
 0x2f3   : > { %v1570_v20 = vpop.permute.xlu2 %1569 }
 0x2f4   : > { %v1575_v21 = vsel %vm1508_vm3, %v1570_v20, 0 }
 0x2f5   : > { %1584 = vmatpush.bf16.msra.mxu2 %v1575_v21 }
 0x2f6   : > { %v3198_v18 = vpop.eup %3197 }
 0x2f7   : > { %v1619_v19 = vsel %vm1473_vm2, %v3198_v18, 0.0 }
 0x2f8   : > { %1620 = vadd.xlane.f32.xlu1 %v1619_v19 }
 0x2fd   : > { %v1860_v10 = vpop.f32.mrf.mxu1 }
 0x304   : > { %1681 = vrot.lane.b32.xlu0 %v1568_v62, %s3650_s16 }
 0x305   : > { %v1862_v17 = vpop.f32.mrf.mxu1 }
 0x311   : > { %1625 = vrot.lane.b32.xlu1 %v1568_v62, %s3648_s6 }
 0x353   : > { %v1562_v22 = vpop.xlane.xlu0 %1561 }
 0x354   : > { %3199 = vrcp.f32 %v1562_v22 }
 0x35a   : > { %v3200_v23 = vpop.eup %3199 }
 0x35b   : > { %v1564_v24 = vmul.f32 %v3200_v23, %v3192_v3 }
 0x35d   : > { %v1565_v25 = vpack.c.bf16 %v1564_v24, %v1564_v24 }
 0x35f   : > { %2873 = vmatmul.msk.bf16.vlgmr.msra.gmra.mxu2 %vm1473_vm2, %v1565_v25 }
 0x363   : > { %v1677_v26 = vpop.xlane.xlu0 %1676 }
 0x364   : > { %3201 = vrcp.f32 %v1677_v26 }
 0x36a   : > { %v3202_v28 = vpop.eup %3201 }
 0x36b   : > { %v1521_v27 = vpop.f32.mrf.mxu0  ;;  %v1679_v30 = vmul.f32 %v3202_v28, %v3196_v15  ;;  %v1621_v31 = vpop.xlane.xlu1 %1620 }
 0x36c   : > { %3203 = vrcp.f32 %v1621_v31 }
 0x36d   : > { %v1680_v34 = vpack.c.bf16 %v1679_v30, %v1679_v30  ;;  %3205 = vrcp.f32 %v3654_v1  ;;  %v3180_v30 = vld [vmem:[%s4617_s1] ss:$0 sm:$0xff] }
 0x372   : > { %v3204_v35 = vpop.eup %3203 }
 0x373   : > { %v1523_v29 = vpop.f32.mrf.mxu0  ;;  %v1623_v36 = vmul.f32 %v3204_v35, %v3198_v18  ;;  %v3206_v2 = vpop.eup %3205 }
 0x374   : > { %v1763_v3 = vmul.f32 32.0, %v3206_v2  ;;  %vm1767_vm6 = vweird.f32 %v3206_v2 }
 0x375   : > { %v1624_v39 = vpack.c.bf16 %v1623_v36, %v1623_v36 }
 0x376   : > { %v1682_v32 = vpop.permute.xlu0 %1681  ;;  %v1764_v5 = vsub.f32 1.0, %v1763_v3 }
 0x377   : > { %v1687_v33 = vsel %vm1508_vm3, %v1682_v32, 0 }
 0x378   : > { %1696 = vmatpush.bf16.msrb.mxu2 %v1687_v33  ;;  %v1765_v7 = vmul.f32 %v3206_v2, %v1764_v5 }
 0x37a   : > { %v1766_v9 = vadd.f32 %v3206_v2, %v1765_v7  ;;  %v3183_v7 = vld [vmem:[%s1335_s25] ss:$0 sm:$0xff]  ;;  %s4623_s25 = scalar_lea.vmem [#allocation14], %s4081_s7 }
 0x37b   : > { %2877 = vmatmul.msk.bf16.vlgmr.msrb.gmra.mxu2 %vm1473_vm2, %v1680_v34 }
 0x37c   : > { %v4271_v11 = vsel %vm1767_vm6, %v3206_v2, %v1766_v9 }
 0x383   : > { %v1626_v37 = vpop.permute.xlu1 %1625 }
 0x384   : > { %v1631_v38 = vsel %vm1508_vm3, %v1626_v37, 0  ;;  %v3182_v37 = vld [vmem:[%s4619_s21] ss:$0 sm:$0xff] }
 0x385   : > { %1640 = vmatpush.bf16.msra.mxu0 %v1631_v38 }
 0x388   : > { %2875 = vmatmul.msk.bf16.vlgmr.msra.gmra.mxu0 %vm1473_vm2, %v1624_v39 }
 0x389   : > { %1816 = vmatpush.bf16.msrb.mxu0 %v3003_v6 }
 0x38d   : > { %1817 = vmatpush.bf16.msrb.mxu0 %v3002_v8 }
 0x3e2   : > { %v1586_v40 = vpop.f32.mrf.mxu2 }
 0x3e3   : > { %1703 = vrot.lane.b32.xlu2 %v1586_v40, %s3651_s22 }
 0x3ea   : > { %v1588_v41 = vpop.f32.mrf.mxu2 }
 0x3fe   : > { %v1698_v42 = vpop.f32.mrf.mxu2 }
 0x3ff   : > { %1711 = vrot.lane.b32.xlu2 %v1698_v42, %s3652_s0 }
 0x405   : > { %v1642_v43 = vpop.f32.mrf.mxu0 }
 0x406   : > { %v1700_v44 = vpop.f32.mrf.mxu2  ;;  %1707 = vrot.lane.b32.xlu0 %v1642_v43, %s3653_s14 }
 0x40d   : > { %v1644_v45 = vpop.f32.mrf.mxu0 }
 0x43d   : > { %v1704_v48 = vpop.permute.xlu2 %1703 }
 0x43e   : > { %v1714_v49 = vsel %vm1473_vm2, %v1521_v27, %v1704_v48 }
 0x459   : > { %v1712_v51 = vpop.permute.xlu2 %1711 }
 0x478   : > { %v1708_v50 = vpop.permute.xlu0 %1707 }
 0x479   : > { %v1716_v52 = vsel %vm1715_vm4, %v1714_v49, %v1708_v50  ;;  %v3007_v49 = vld [vmem:[%s4620_s30 + $0x8] sm:$0xff] }
 0x47a   : > { %v1718_v53 = vsel %vm1717_vm5, %v1716_v52, %v1712_v51  ;;  %1891 = vmatpush.bf16.msra.mxu2 %v3007_v49  ;;  %v3006_v50 = vld [vmem:[%s4621_s13] sm:$0xff] }
 0x47b   : > { %v1719_v54 = vpack.c.bf16 %v1718_v53, %v1718_v53 }
 0x47d   : > { %2886 = vmatmul.msk.bf16.vlgmr.msra.gmra.mxu3 %vm1387_vm1, %v1719_v54 }
 0x47e   : > { %1892 = vmatpush.bf16.msra.mxu2 %v3006_v50 }
 0x481   : > { %2917 = vmatmul.msk.bf16.vlgmr.msra.gmra.mxu2 %vm1387_vm1, %v4253_v57 }
 0x500   : > { %v1752_v59 = vpop.f32.mrf.mxu3 }
 0x501   : > { %v1753_v60 = vadd.f32 %v3179_v58, %v1752_v59 }
 0x503   : > { %v1756_v61 = vadd.f32 %v1753_v60, %v4182_v4  ;;  %v3181_v4 = vld [vmem:[%s4616_s4] ss:$0 sm:$0xff] }
 0x504   : > { %v1861_v13 = vadd.f32 %v3181_v4, %v1860_v10  ;;  %v1863_v18 = vadd.f32 %v3181_v4, %v1862_v17  ;;  %v1894_v8 = vpop.f32.mrf.mxu2 }
 0x505   : > { %v1758_v62 = vmul.f32 %v1756_v61, %v1756_v61  ;;  %v1895_v9 = vadd.f32 %v3183_v7, %v1894_v8 }
 0x506   : > { %v1900_v16 = vpack.c.bf16 %v1861_v13, %v1861_v13  ;;  %v1901_v20 = vpack.c.bf16 %v1863_v18, %v1863_v18 }
 0x507   : > { %v1759_v63 = vsel %vm1387_vm1, %v1758_v62, 0.0  ;;  %v1902_v4 = vpack.c.bf16 %v1895_v9, %v1895_v9 }
 0x508   : > { %v1754_v0 = vpop.f32.mrf.mxu3  ;;  %1760 = vadd.xlane.f32.xlu1 %v1759_v63  ;;  %v1906_v19 = vunpack.c.l.b16 %v1900_v16  ;;  %v1907_v21 = vunpack.c.l.b16 %v1901_v20 }
 0x509   : > { %v1942_v13 = vunpack.c.l.b16 %v1902_v4 }
 0x50a   : > { %v1908_v24 = vpack.c.b16 %v1907_v21, %v1906_v19 }
 0x50c   : > { %1967 = vrot.lane.b32.xlu0 %v1908_v24, %s3649_s15  ;;  %v1913_v26 = vsel %vm1473_vm2, %v1908_v24, 0  ;;  %v1896_v10 = vpop.f32.mrf.mxu2 }
 0x50d   : > { %1922 = vmatpush.bf16.xpose.msrb.mxu3 %v1913_v26 }
 0x514   : > { %2021 = vrot.lane.b32.xlu0 %v1908_v24, %s3648_s6 }
 0x57b   : > { %v1761_v12 = vpop.xlane.xlu1 %1760 }
 0x57c   : > { %v1769_v14 = vmul.f32 %v4271_v11, %v1761_v12  ;;  %v1897_v12 = vadd.f32 %v3183_v7, %v1896_v10 }
 0x57e   : > { %v1770_v15 = vadd.f32 1.1920929e-07, %v1769_v14  ;;  %v1968_v35 = vpop.permute.xlu0 %1967  ;;  %v1903_v14 = vpack.c.bf16 %v1897_v12, %v1897_v12 }
 0x57f   : > { %v1973_v36 = vsel %vm1473_vm2, %v1968_v35, 0 }
 0x580   : > { %3207 = vrsqrt.f32 %v1770_v15  ;;  %vm1777_vm8 = vweird.f32 %v1770_v15  ;;  %1982 = vmatpush.bf16.xpose.msrb.mxu1 %v1973_v36 }
 0x586   : > { %v3208_v22 = vpop.eup %3207  ;;  %v2022_v40 = vpop.permute.xlu0 %2021 }
 0x587   : > { %v1772_v23 = vmul.f32 %v3208_v22, %v1770_v15  ;;  %vm1778_vm7 = vweird.f32 %v3208_v22  ;;  %v2027_v41 = vsel %vm1473_vm2, %v2022_v40, 0  ;;  %v1943_v15 = vunpack.c.l.b16 %v1903_v14 }
 0x588   : > { %vm1779_vm9 = vmor %vm1777_vm8, %vm1778_vm7  ;;  %2036 = vmatpush.bf16.xpose.msra.mxu3 %v2027_v41 }
 0x589   : > { %v1773_v25 = vmul.f32 %v3208_v22, %v1772_v23  ;;  %v1944_v16 = vpack.c.b16 %v1943_v15, %v1942_v13 }
 0x58b   : > { %v1774_v27 = vmul.f32 0.5, %v1773_v25  ;;  %1956 = vmatpush.bf16.msra.mxu0 %v1944_v16 }
 0x58d   : > { %v1775_v28 = vsub.f32 1.5, %v1774_v27 }
 0x58f   : > { %v1776_v29 = vmul.f32 %v3208_v22, %v1775_v28 }
 0x591   : > { %v1780_v31 = vsel %vm1779_vm9, %v3208_v22, %v1776_v29 }
 0x592   : > { %v1781_v32 = vmul.f32 %v1780_v31, %v1756_v61 }
 0x594   : > { %v4279_v33 = vmul.f32 %v3180_v30, %v1781_v32 }
 0x596   : > { %v1786_v34 = vpack.c.bf16 %v4279_v33, %v4279_v33 }
 0x598   : > { %2895 = vmatmul.msk.bf16.vlgmr.msrb.gmra.mxu0 %vm1387_vm1, %v1786_v34 }
 0x615   : > { %v1819_v38 = vpop.f32.mrf.mxu0 }
 0x616   : > { %v1820_v39 = vadd.f32 %v3182_v37, %v1819_v38 }
 0x618   : > { %v1899_v42 = vpack.c.bf16 %v1820_v39, %v1820_v39 }
 0x61a   : > { %v1963_v43 = vunpack.c.l.b16 %v1899_v42  ;;  %2918 = vmatmul.msk.bf16.vlgmr.msrb.gmra.mxu3 %vm1473_vm2, %v1899_v42 }
 0x61c   : > { %v1964_v44 = vpack.c.b16 %v1963_v43, %v1963_v43 }
 0x61d   : > { %v1821_v45 = vpop.f32.mrf.mxu0 }
 0x61e   : > { %2019 = vrot.lane.b32.xlu0 %v1964_v44, %s3648_s6  ;;  %1965 = vrot.lane.b32.xlu2 %v1964_v44, %s3649_s15 }
 0x626   : > { %2075 = vrot.lane.b32.xlu2 %v1908_v24, %s3650_s16 }
 0x62e   : > { %2073 = vrot.lane.b32.xlu2 %v1964_v44, %s3650_s16 }
 0x678   : > { %v1966_v46 = vpop.permute.xlu2 %1965 }
 0x679   : > { %2920 = vmatmul.msk.bf16.vlgmr.msrb.gmra.mxu1 %vm1473_vm2, %v1966_v46 }
 0x680   : > { %v2076_v47 = vpop.permute.xlu2 %2075 }
 0x681   : > { %v2081_v48 = vsel %vm1473_vm2, %v2076_v47, 0 }
 0x682   : > { %2090 = vmatpush.bf16.xpose.msra.mxu1 %v2081_v48 }
 0x688   : > { %v2074_v51 = vpop.permute.xlu2 %2073 }
 0x689   : > { %2924 = vmatmul.msk.bf16.vlgmr.msra.gmra.mxu1 %vm1473_vm2, %v2074_v51 }
 0x690   : > { %v2020_v52 = vpop.permute.xlu0 %2019 }
 0x691   : > { %2922 = vmatmul.msk.bf16.vlgmr.msra.gmra.mxu3 %vm1473_vm2, %v2020_v52 }
 0x69d   : > { %v1924_v53 = vpop.f32.mrf.mxu3 }
 0x69e   : > { %v1928_v54 = vsel %vm1715_vm4, %v1924_v53, -inf }
 0x69f   : > { %1929 = vmax.xlane.f32.xlu2 %v1928_v54 }
 0x6a5   : > { %v1926_v55 = vpop.f32.mrf.mxu3 }
 0x6f6   : > { %v1984_v56 = vpop.f32.mrf.mxu1 }
 0x6f7   : > { %v1988_v58 = vsel %vm1715_vm4, %v1984_v56, -inf }
 0x6f8   : > { %1989 = vmax.xlane.f32.xlu0 %v1988_v58 }
 0x6fe   : > { %v1986_v59 = vpop.f32.mrf.mxu1 }
 0x706   : > { %v2092_v60 = vpop.f32.mrf.mxu1 }
 0x707   : > { %v2096_v3 = vsel %vm1715_vm4, %v2092_v60, -inf }
 0x70c   : > { %2000 = vrot.lane.b32.xlu0 %v1944_v16, %s3649_s15 }
 0x70e   : > { %v2094_v61 = vpop.f32.mrf.mxu1 }
 0x70f   : > { %v3009_v61 = vld [vmem:[%s4623_s25 + $0x8] sm:$0xff] }
 0x710   : > { %2172 = vmatpush.bf16.msrb.mxu3 %v3009_v61 }
 0x712   : > { %v1930_v62 = vpop.xlane.xlu2 %1929 }
 0x713   : > { %v1931_v63 = vsub.f32 %v1924_v53, %v1930_v62 }
 0x714   : > { %v2038_v0 = vpop.f32.mrf.mxu3 }
 0x715   : > { %v2042_v57 = vsel %vm1715_vm4, %v2038_v0, -inf  ;;  %v1932_v1 = vmul.f32 1.442695, %v1931_v63 }
 0x716   : > { %2043 = vmax.xlane.f32.xlu1 %v2042_v57 }
 0x717   : > { %3209 = vpow2.f32 %v1932_v1 }
 0x71c   : > { %v2040_v2 = vpop.f32.mrf.mxu3 }
 0x71d   : > { %v3210_v5 = vpop.eup %3209 }
 0x71e   : > { %2097 = vmax.xlane.f32.xlu1 %v2096_v3  ;;  %v1934_v6 = vsel %vm1715_vm4, %v3210_v5, 0.0 }
 0x726   : > { %1935 = vadd.xlane.f32.xlu1 %v1934_v6  ;;  %v3184_v6 = vld [vmem:[%s1338_s8] ss:$0 sm:$0xff] }
 0x76b   : > { %v1990_v17 = vpop.xlane.xlu0 %1989 }
 0x76c   : > { %v1991_v18 = vsub.f32 %v1984_v56, %v1990_v17 }
 0x76e   : > { %v1992_v19 = vmul.f32 1.442695, %v1991_v18 }
 0x770   : > { %3211 = vpow2.f32 %v1992_v19 }
 0x776   : > { %v3212_v20 = vpop.eup %3211 }
 0x777   : > { %v1994_v21 = vsel %vm1715_vm4, %v3212_v20, 0.0 }
 0x778   : > { %1995 = vadd.xlane.f32.xlu1 %v1994_v21 }
 0x77e   : > { %v2001_v37 = vpop.permute.xlu0 %2000 }
 0x77f   : > { %2013 = vmatpush.bf16.msrb.mxu2 %v2001_v37  ;;  %v3186_v37 = vld [vmem:[%s1344_s18] ss:$0 sm:$0xff] }
 0x789   : > { %v2044_v22 = vpop.xlane.xlu1 %2043 }
 0x78a   : > { %v2045_v23 = vsub.f32 %v2038_v0, %v2044_v22 }
 0x78c   : > { %v2046_v24 = vmul.f32 1.442695, %v2045_v23  ;;  %v3185_v23 = vld [vmem:[%s1341_s26] ss:$0 sm:$0xff] }
 0x78e   : > { %3213 = vpow2.f32 %v2046_v24 }
 0x791   : > { %v2098_v25 = vpop.xlane.xlu1 %2097 }
 0x792   : > { %v2099_v26 = vsub.f32 %v2092_v60, %v2098_v25 }
 0x794   : > { %v3214_v27 = vpop.eup %3213  ;;  %v2100_v28 = vmul.f32 1.442695, %v2099_v26 }
 0x795   : > { %v2048_v29 = vsel %vm1715_vm4, %v3214_v27, 0.0 }
 0x796   : > { %3215 = vpow2.f32 %v2100_v28  ;;  %2049 = vadd.xlane.f32.xlu1 %v2048_v29  ;;  %v3655_v28 = vmov 1.4142135  }
 0x799   : > { %v1936_v30 = vpop.xlane.xlu1 %1935 }
 0x79a   : > { %3217 = vrcp.f32 %v1936_v30 }
 0x79c   : > { %v3216_v31 = vpop.eup %3215 }
 0x79d   : > { %v2102_v32 = vsel %vm1715_vm4, %v3216_v31, 0.0 }
 0x79e   : > { %2103 = vadd.xlane.f32.xlu2 %v2102_v32 }
 0x7a0   : > { %v3218_v34 = vpop.eup %3217 }
 0x7a1   : > { %v1938_v35 = vmul.f32 %v3218_v34, %v3210_v5  ;;  %v3019_v34 = vld [vmem:[%s4176_s29 + $0x38] sm:$0xff] }
 0x7a2   : > { %2359 = vmatpush.bf16.msrb.mxu1 %v3019_v34 }
 0x7a3   : > { %v1939_v36 = vpack.c.bf16 %v1938_v35, %v1938_v35 }
 0x7a5   : > { %2919 = vmatmul.msk.bf16.vlgmr.msra.gmra.mxu0 %vm1715_vm4, %v1939_v36  ;;  %v3018_v36 = vld [vmem:[%s4176_s29 + $0x30] sm:$0xff] }
 0x7a6   : > { %2360 = vmatpush.bf16.msrb.mxu1 %v3018_v36 }
 0x7af   : > { %2054 = vrot.lane.b32.xlu1 %v1944_v16, %s3648_s6  ;;  %s4624_s6 = smov %s4623_s25 }
 0x7b0   : > { %v3008_v62 = vld [vmem:[%s4624_s6] sm:$0xff] }
 0x7b1   : > { %2173 = vmatpush.bf16.msrb.mxu3 %v3008_v62  ;;  %v3012_v62 = vld [vmem:[%s4176_s29] sm:$0xff] }
 0x7b6   : > { %2108 = vrot.lane.b32.xlu2 %v1944_v16, %s3650_s16 }
 0x7eb   : > { %v1996_v38 = vpop.xlane.xlu1 %1995 }
 0x7ec   : > { %3219 = vrcp.f32 %v1996_v38 }
 0x7f2   : > { %v3220_v39 = vpop.eup %3219 }
 0x7f3   : > { %v1998_v40 = vmul.f32 %v3220_v39, %v3212_v20 }
 0x7f5   : > { %v1999_v41 = vpack.c.bf16 %v1998_v40, %v1998_v40  ;;  %v3017_v40 = vld [vmem:[%s4176_s29 + $0x28] sm:$0xff] }
 0x7f6   : > { %2361 = vmatpush.bf16.msrb.mxu1 %v3017_v40 }
 0x7f7   : > { %2921 = vmatmul.msk.bf16.vlgmr.msrb.gmra.mxu2 %vm1715_vm4, %v1999_v41 }
 0x809   : > { %v2050_v43 = vpop.xlane.xlu1 %2049 }
 0x811   : > { %v2104_v42 = vpop.xlane.xlu2 %2103 }
 0x812   : > { %3221 = vrcp.f32 %v2104_v42 }
 0x813   : > { %3223 = vrcp.f32 %v2050_v43  ;;  %v3016_v43 = vld [vmem:[%s4176_s29 + $0x20] sm:$0xff] }
 0x814   : > { %2362 = vmatpush.bf16.msrb.mxu1 %v3016_v43 }
 0x818   : > { %v3222_v44 = vpop.eup %3221 }
 0x819   : > { %v2106_v45 = vmul.f32 %v3222_v44, %v3216_v31  ;;  %v2109_v46 = vpop.permute.xlu2 %2108  ;;  %v3224_v48 = vpop.eup %3223 }
 0x81a   : > { %2121 = vmatpush.bf16.msra.mxu2 %v2109_v46  ;;  %v2052_v49 = vmul.f32 %v3224_v48, %v3214_v27 }
 0x81b   : > { %v2107_v47 = vpack.c.bf16 %v2106_v45, %v2106_v45 }
 0x81c   : > { %v2053_v52 = vpack.c.bf16 %v2052_v49, %v2052_v49 }
 0x81d   : > { %2925 = vmatmul.msk.bf16.vlgmr.msra.gmra.mxu2 %vm1715_vm4, %v2107_v47  ;;  %v3015_v47 = vld [vmem:[%s4176_s29 + $0x18] sm:$0xff] }
 0x81e   : > { %2363 = vmatpush.bf16.msrb.mxu1 %v3015_v47 }
 0x821   : > { %v2055_v50 = vpop.permute.xlu1 %2054 }
 0x822   : > { %v1958_v51 = vpop.f32.mrf.mxu0  ;;  %2067 = vmatpush.bf16.msrb.mxu0 %v2055_v50 }
 0x825   : > { %2923 = vmatmul.msk.bf16.vlgmr.msrb.gmra.mxu0 %vm1715_vm4, %v2053_v52  ;;  %v3014_v52 = vld [vmem:[%s4176_s29 + $0x10] sm:$0xff] }
 0x826   : > { %2364 = vmatpush.bf16.msrb.mxu1 %v3014_v52 }
 0x82a   : > { %v1960_v53 = vpop.f32.mrf.mxu0 }
 0x87a   : > { %v2015_v54 = vpop.f32.mrf.mxu2 }
 0x87b   : > { %2128 = vrot.lane.b32.xlu0 %v2015_v54, %s3651_s22 }
 0x882   : > { %v2017_v55 = vpop.f32.mrf.mxu2 }
 0x8a0   : > { %v2123_v56 = vpop.f32.mrf.mxu2 }
 0x8a1   : > { %2136 = vrot.lane.b32.xlu2 %v2123_v56, %s3652_s0  ;;  %s4626_s0 = scalar_lea.vmem [#allocation15], %s4081_s7 }
 0x8a2   : > { %v2069_v58 = vpop.f32.mrf.mxu0  ;;  %v3011_v13 = vld [vmem:[%s4626_s0 + $0x8] sm:$0xff] }
 0x8a3   : > { %2132 = vrot.lane.b32.xlu0 %v2069_v58, %s3653_s14  ;;  %2232 = vmatpush.bf16.msra.mxu0 %v3011_v13  ;;  %s4627_s14 = smov %s4626_s0  ;;  %v3013_v58 = vld [vmem:[%s4176_s29 + $0x8] sm:$0xff] }
 0x8a4   : > { %v3010_v14 = vld [vmem:[%s4627_s14] sm:$0xff]  ;;  %2365 = vmatpush.bf16.msrb.mxu1 %v3013_v58 }
 0x8a7   : > { %2233 = vmatpush.bf16.msra.mxu0 %v3010_v14 }
 0x8a8   : > { %v2125_v59 = vpop.f32.mrf.mxu2  ;;  %2366 = vmatpush.bf16.msrb.mxu1 %v3012_v62 }
 0x8aa   : > { %v2071_v60 = vpop.f32.mrf.mxu0 }
 0x8ed   : > { %v2129_v63 = vpop.permute.xlu0 %2128 }
 0x8ee   : > { %v2139_v0 = vsel %vm1473_vm2, %v1958_v51, %v2129_v63 }
 0x8fb   : > { %v2137_v1 = vpop.permute.xlu2 %2136 }
 0x915   : > { %v2133_v57 = vpop.permute.xlu0 %2132 }
 0x916   : > { %v2140_v2 = vsel %vm1715_vm4, %v2139_v0, %v2133_v57 }
 0x917   : > { %v2141_v3 = vsel %vm1717_vm5, %v2140_v2, %v2137_v1 }
 0x918   : > { %v2142_v5 = vpack.c.bf16 %v2141_v3, %v2141_v3 }
 0x91a   : > { %2934 = vmatmul.msk.bf16.vlgmr.msrb.gmra.mxu3 %vm1387_vm1, %v2142_v5 }
 0x99d   : > { %v2175_v7 = vpop.f32.mrf.mxu3 }
 0x99e   : > { %v2176_v8 = vadd.f32 %v3184_v6, %v2175_v7 }
 0x9a0   : > { %v2179_v9 = vadd.f32 %v2176_v8, %v4279_v33 }
 0x9a2   : > { %v2181_v4 = vmul.f32 %v2179_v9, %v2179_v9 }
 0x9a4   : > { %v2182_v10 = vsel %vm1387_vm1, %v2181_v4, 0.0 }
 0x9a5   : > { %v2177_v12 = vpop.f32.mrf.mxu3  ;;  %2183 = vadd.xlane.f32.xlu0 %v2182_v10 }
 0xa18   : > { %v2184_v15 = vpop.xlane.xlu0 %2183 }
 0xa19   : > { %v2185_v16 = vmul.f32 %v2184_v15, %v4271_v11 }
 0xa1b   : > { %v2186_v17 = vadd.f32 1.1920929e-07, %v2185_v16 }
 0xa1d   : > { %3225 = vrsqrt.f32 %v2186_v17  ;;  %vm2193_vm11 = vweird.f32 %v2186_v17 }
 0xa1e   : > { %3227 = vrcp.f32 %v3655_v28 }
 0xa23   : > { %v3226_v18 = vpop.eup %3225 }
 0xa24   : > { %v2188_v19 = vmul.f32 %v3226_v18, %v2186_v17  ;;  %vm2194_vm10 = vweird.f32 %v3226_v18  ;;  %v3228_v29 = vpop.eup %3227 }
 0xa25   : > { %vm2195_vm12 = vmor %vm2193_vm11, %vm2194_vm10  ;;  %v2241_v30 = vmul.f32 1.4142135, %v3228_v29  ;;  %vm2245_vm13 = vweird.f32 %v3228_v29 }
 0xa26   : > { %v2189_v33 = vmul.f32 %v3226_v18, %v2188_v19 }
 0xa27   : > { %v2242_v31 = vsub.f32 1.0, %v2241_v30 }
 0xa28   : > { %v2190_v20 = vmul.f32 0.5, %v2189_v33 }
 0xa29   : > { %v2243_v32 = vmul.f32 %v3228_v29, %v2242_v31 }
 0xa2a   : > { %v2191_v21 = vsub.f32 1.5, %v2190_v20 }
 0xa2b   : > { %v2244_v35 = vadd.f32 %v3228_v29, %v2243_v32 }
 0xa2c   : > { %v2192_v22 = vmul.f32 %v3226_v18, %v2191_v21 }
 0xa2d   : > { %v2246_v39 = vsel %vm2245_vm13, %v3228_v29, %v2244_v35 }
 0xa2e   : > { %v2196_v24 = vsel %vm2195_vm12, %v3226_v18, %v2192_v22 }
 0xa2f   : > { %v2197_v25 = vmul.f32 %v2196_v24, %v2179_v9  ;;  %v3187_v24 = vld [vmem:[%s1352_s27] ss:$0 sm:$0xff] }
 0xa31   : > { %v4354_v26 = vmul.f32 %v3185_v23, %v2197_v25 }
 0xa33   : > { %v2202_v27 = vpack.c.bf16 %v4354_v26, %v4354_v26 }
 0xa35   : > { %2943 = vmatmul.msk.bf16.vlgmr.msra.gmra.mxu0 %vm1387_vm1, %v2202_v27 }
 0xab2   : > { %v2235_v38 = vpop.f32.mrf.mxu0 }
 0xab3   : > { %v2236_v41 = vadd.f32 %v3186_v37, %v2235_v38 }
 0xab5   : > { %v2247_v42 = vmul.f32 %v2246_v39, %v2236_v41  ;;  %v2239_v20 = vmul.f32 0.5, %v2236_v41 }
 0xab7   : > { %v2248_v44 = vmul.f32 %v2247_v42, %v2247_v42 }
 0xab9   : > { %v2249_v45 = vmin.f32 %v2248_v44, 16.0 }
 0xaba   : > { %v2237_v46 = vpop.f32.mrf.mxu0 }
 0xabb   : > { %v2250_v48 = vmul.f32 2.1237322e-06, %v2249_v45  ;;  %v2261_v49 = vmul.f32 3.8918573e-05, %v2249_v45 }
 0xabd   : > { %v2251_v50 = vadd.f32 0.00028619796, %v2250_v48  ;;  %v2262_v51 = vadd.f32 0.001143296, %v2261_v49 }
 0xabf   : > { %v2252_v53 = vmul.f32 %v2251_v50, %v2249_v45  ;;  %v2263_v54 = vmul.f32 %v2262_v51, %v2249_v45 }
 0xac1   : > { %v2264_v55 = vadd.f32 0.014752088, %v2263_v54  ;;  %v2253_v56 = vadd.f32 0.0036580483, %v2252_v53 }
 0xac3   : > { %v2265_v59 = vmul.f32 %v2264_v55, %v2249_v45  ;;  %v2254_v61 = vmul.f32 %v2253_v56, %v2249_v45 }
 0xac5   : > { %v2266_v60 = vadd.f32 0.112945676, %v2265_v59  ;;  %v2255_v57 = vadd.f32 0.05243302, %v2254_v61 }
 0xac7   : > { %v2267_v63 = vmul.f32 %v2266_v60, %v2249_v45  ;;  %v2256_v3 = vmul.f32 %v2255_v57, %v2249_v45 }
 0xac9   : > { %v2268_v0 = vadd.f32 0.4994258, %v2267_v63  ;;  %v2257_v5 = vadd.f32 0.18741608, %v2256_v3 }
 0xacb   : > { %v2269_v1 = vmul.f32 %v2268_v0, %v2249_v45  ;;  %v2258_v7 = vmul.f32 %v2257_v5, %v2249_v45 }
 0xacd   : > { %v2270_v2 = vadd.f32 1.0, %v2269_v1  ;;  %v2259_v10 = vadd.f32 1.1283791, %v2258_v7 }
 0xacf   : > { %3229 = vrcp.f32 %v2270_v2  ;;  %v2282_v4 = vand.u32 2147483648, %v2270_v2  ;;  %v2280_v13 = vand.u32 2147483647, %v2270_v2  ;;  %vm2276_vm15 = vweird.f32 %v2270_v2 }
 0xad0   : > { %v2260_v16 = vmul.f32 %v2259_v10, %v2247_v42 }
 0xad1   : > { %v2283_v15 = vor.u32 1.1754944e-38, %v2282_v4  ;;  %vm2281_vm2 = vcmp.eq.f32.partialorder %v2280_v13, 8.507059e+37 }
 0xad5   : > { %v3230_v6 = vpop.eup %3229 }
 0xad6   : > { %v2272_v8 = vmul.f32 %v3230_v6, %v2270_v2  ;;  %vm2277_vm14 = vweird.f32 %v3230_v6 }
 0xad7   : > { %vm2278_vm0 = vmor %vm2276_vm15, %vm2277_vm14 }
 0xad8   : > { %v2273_v9 = vsub.f32 1.0, %v2272_v8 }
 0xada   : > { %v2274_v12 = vmul.f32 %v3230_v6, %v2273_v9 }
 0xadc   : > { %v2275_v14 = vadd.f32 %v3230_v6, %v2274_v12 }
 0xade   : > { %v2279_v17 = vsel %vm2278_vm0, %v3230_v6, %v2275_v14 }
 0xadf   : > { %v2284_v18 = vsel %vm2281_vm2, %v2283_v15, %v2279_v17 }
 0xae0   : > { %v2285_v19 = vmul.f32 %v2284_v18, %v2260_v16 }
 0xae2   : > { %v2944_v33 = vclamps-f32 %v2285_v19, 1.0 }
 0xae4   : > { %v2288_v21 = vadd.f32 1.0, %v2944_v33 }
 0xae6   : > { %v2289_v22 = vmul.f32 %v2288_v21, %v2239_v20 }
 0xae8   : > { %v2290_v23 = vpack.c.bf16 %v2289_v22, %v2289_v22 }
 0xaea   : > { %2367 = vmatmul.bf16.vlgmr.msrb.gmra.mxu1 %v2290_v23 }
 0xb67   : > { %v2368_v25 = vpop.f32.mrf.mxu1 }
 0xb68   : > { %v2369_v27 = vadd.f32 %v3187_v24, %v2368_v25 }
 0xb6a   : > { %v2372_v28 = vadd.f32 %v2369_v27, %v4354_v26  ;;  %v3188_v26 = vld [vmem:[%s1134_s9] ss:$0 sm:$0xff] }
 0xb6c   : > { %v2374_v29 = vmul.f32 %v2372_v28, %v2372_v28 }
 0xb6e   : > { %v2375_v30 = vsel %vm1387_vm1, %v2374_v29, 0.0 }
 0xb6f   : > { %v2370_v31 = vpop.f32.mrf.mxu1  ;;  %2376 = vadd.xlane.f32.xlu1 %v2375_v30 }
 0xbe2   : > { %v2377_v32 = vpop.xlane.xlu1 %2376 }
 0xbe3   : > { %v2378_v34 = vmul.f32 %v2377_v32, %v4271_v11 }
 0xbe5   : > { %v2379_v35 = vadd.f32 1.1920929e-07, %v2378_v34 }
 0xbe7   : > { %3231 = vrsqrt.f32 %v2379_v35  ;;  %vm2386_vm4 = vweird.f32 %v2379_v35 }
 0xbed   : > { %v3232_v36 = vpop.eup %3231 }
 0xbee   : > { %v2381_v37 = vmul.f32 %v3232_v36, %v2379_v35  ;;  %vm2387_vm3 = vweird.f32 %v3232_v36 }
 0xbef   : > { %vm2388_vm5 = vmor %vm2386_vm4, %vm2387_vm3 }
 0xbf0   : > { %v2382_v38 = vmul.f32 %v3232_v36, %v2381_v37 }
 0xbf2   : > { %v2383_v39 = vmul.f32 0.5, %v2382_v38 }
 0xbf4   : > { %v2384_v40 = vsub.f32 1.5, %v2383_v39 }
 0xbf6   : > { %v2385_v41 = vmul.f32 %v3232_v36, %v2384_v40 }
 0xbf8   : > { %v2389_v42 = vsel %vm2388_vm5, %v3232_v36, %v2385_v41 }
 0xbf9   : > { %v2390_v43 = vmul.f32 %v2389_v42, %v2372_v28  ;;  %2399 = sbr.rel (%p2977_p12) target bundleno = 3071 (0xbff), region = 168 }
 0xbfb   : > { %v2394_v44 = vmul.f32 %v3188_v26, %v2390_v43 }
 0xbfd   : > { %2395 = vst.msk [vmem:[#allocation2] sm:$0xff] %vm1387_vm1, %v2394_v44 }
 0xbfe   : > { %2400 = vst.msk [vmem:[%s1289_s20] sm:$0xff] %vm1387_vm1, %v2394_v44 }
 0xbff PF: > { %s4632_s27 = sld [smem:[#allocation38_spill]]  ;;  %s2414_s13 = sshll.u32 %s1289_s20, 4  ;;  %s2415_s13 = int_to_ptr.vmem [resolvable:$true] %s2414_s13 }
 0xc00   : > { %s4633_s28 = sld [smem:[#allocation71_spill]] }
 0xc01   : > { %s4635_s10 = sld [smem:[#allocation28_spill]] }
 0xc06   : > { %s4634_s21 = smov %s4633_s28  ;;  %s2412_s30 = scalar_lea.hbm %s4633_s28, %s4632_s27 }
 0xc07   : > { %s2416_s5 = sshll.u32 %s2412_s30, 4  ;;  %s4637_s19 = sand.u32 1, %s4635_s10   ;;  %s2417_s5 = int_to_ptr.hbm [resolvable:$true] %s2416_s5 }
 0xc08   : > { %s2402_s17 = scalar_lea.sflag [#allocation5], %s4637_s19  ;;  %s3517_s25 = sshra.s32 %s2417_s5, 4  ;;  %s3518_s25 = int_to_ptr.hbm [resolvable:$true] %s3517_s25 }
 0xc09   : > { %s3519_s6 = scalar_lea.hbm %s3518_s25, 8  ;;  %s3523_s22 = scalar_lea.hbm %s4634_s21, 16 }
 0xc0a   : > { %p3520_p0 = scmp.ne.s32.totalorder %s3518_s25, %s3519_s6  ;;  %p3524_p2 = scmp.lt.s32.totalorder %s3518_s25, %s4634_s21 }
 0xc0b   : > { %p3525_p3 = scmp.lt.s32.totalorder %s3523_s22, %s3519_s6 }
 0xc0c   : > { %p3521_p1 = pnand %p3520_p0, %p3864_p7 }
 0xc0d   : > { %p3526_p4 = por %p3525_p3, %p3524_p2 }
 0xc0e   : > { %p3522_p8 = pneg %p3521_p1 }
 0xc10   : > { %p3527_p6 = pnand %p3526_p4, %p3522_p8 }
 0xc12   : > { %3530 = shalt.err (!%p3527_p6)
}
 0xc13   : > { %3038 = dma.vmem_to_hbm [thread:$0]  (%p3864_p7), %s2415_s13, 128, %s2417_s5, %s2402_s17  }
 0xc14 PF: > { %s4638_s3 = sld [smem:[#allocation33_spill]] }
 0xc15   : > { %s4639_s20 = sld [smem:[#allocation27_spill]] }
 0xc16   : > { %s4640_s8 = sld [smem:[#allocation37_spill]] }
 0xc1a   : > { %p3074_p9 = scmp.ge.s32.totalorder %s4638_s3, 2 }
 0xc1b   : > { %s2428_s23 = sand.u32 1, %s4639_s20  }
 0xc1c   : > { %p4641_p11 = scmp.ne.s32.totalorder %s4640_s8, 0  ;;  %s2429_s11 = scalar_lea.sflag [#allocation5], %s2428_s23 }
 0xc1e   : > { %p3070_p13 = pnand %p3074_p9, %p4641_p11 }
 0xc20   : > { %p3071_p5 = pneg %p3070_p13 }
 0xc22   : > { %3596 = dma.done.wait (%p3071_p5), %s2429_s11, 128  }
 0xc23   : > { %3598 = vsyncadd (%p3071_p5), %s2429_s11, 4294967168  ;;  %s50_s2 = sadd.s32 1, %s4638_s3   ;;  %s4642_s27 = sld [smem:[#allocation25_spill]] }
 0xc24   : > { %p47_p10 = scmp.ge.s32.totalorder %s50_s2, 6   ;;  %s4643_s3 = sld [smem:[#allocation26_spill]] }
 0xc25   : > { %s4644_s7 = sld [smem:[#allocation41_spill]] }
 0xc26   : > { %s4645_s28 = sld [smem:[#allocation28_spill]] }
 0xc27   : > { %s4646_s8 = sld [smem:[#allocation29_spill]] }
 0xc28   : > { %s4647_s4 = sld [smem:[#allocation43_spill]]  ;;  %49 = sbr.rel (!%p47_p10) target bundleno = 43 (0x2b), region = 303 }
 0xc29   : > { %s4648_s29 = sld [smem:[#allocation31_spill]] }
 0xc2a   : > { %s4649_s0 = sld [smem:[#allocation32_spill]] }
 0xc2b   : > { %s4650_s9 = sld [smem:[#allocation39_spill]] }
 0xc2c   : > { %s4651_s30 = sld [smem:[#allocation40_spill]] }
 0xc2d   :  { %2435 = vsyncpa [#allocation4], 1 }
 0xc2e   :  { %2437 = vsyncpa [#allocation4 + $0x1], 1 }
 0xc2f   :  { %2438 = vsyncpa [#allocation7], 1 }
 0xc30   :  { %2439 = vsyncpa [#allocation10], 1 }
 0xc31   :  { %2441 = vsyncpa [#allocation10 + $0x1], 1 }
 0xc32   :  { %2442 = vsyncpa [#allocation13], 1 }
 0xc33   :  { %2444 = vsyncpa [#allocation13 + $0x1], 1 }
 0xc34   :  { %2445 = vsyncpa [#allocation16], 1 }
 0xc35   :  { %2447 = vsyncpa [#allocation16 + $0x1], 1 }
 0xc36   :  { %2448 = vsyncpa [#allocation5], 1 }
 0xc37   :  { %2450 = vsyncpa [#allocation5 + $0x1], 1 }

</bundles_post_ra>
